<compile_context>
chip_gen: v7x
topology: tpu7x:2x2x1
jax: 0.10.0
libtpu: 0.0.40
codegen_flags: <defaults>
</compile_context>

<pallas_src>
from functools import partial

import jax
import jax.numpy as jnp
from jax.experimental import pallas as pl
from jax.experimental.pallas import tpu as pltpu


def cnn_attention_kernel(x_ref, w1_ref, w2t_ref, gamma_ref, beta_ref,
                         out_ref, avg_out_ref, attn_ref,
                         *, scale, eps, use_vpu_fc1):
    # x_ref:      (bb, C, N)  bb batch elements, spatial positions on lanes
    # w1_ref:     (D, C)      fc1 1x1-conv weight (as stored by PyTorch), f32
    # w2t_ref:    (D, C)      fc2 1x1-conv weight, transposed, f32
    # gamma/beta: (D, 1)      LayerNorm affine params (column vectors), f32
    w1 = w1_ref[...]
    w2t = w2t_ref[...]
    gamma = gamma_ref[...]
    beta = beta_ref[...]
    bb, C, N = x_ref.shape
    D = w1.shape[0]
    inv_d = 1.0 / D
    inv_n = 1.0 / N

    def layer_norm(v):                                     # (D, M) f32
        # Sum and sum-of-squares in a single sweep: the two cross-sublane
        # reductions are independent (can overlap on the XLU) instead of the
        # serial mean -> center -> square -> mean chain.  Values are ReLU'd
        # fc1 outputs of O(1) magnitude, so E[v^2]-mu^2 cancellation is benign;
        # the max(., 0) guards rounding-induced tiny negatives.
        s = jnp.sum(v, axis=0, keepdims=True)
        ss = jnp.sum(v * v, axis=0, keepdims=True)
        mu = s * inv_d
        var = jnp.maximum(ss * inv_d - mu * mu, 0.0)
        return (v - mu) * jax.lax.rsqrt(var + eps) * gamma + beta

    # bb is a small static constant (1 or B); the unrolled Python loop keeps
    # every intermediate a simple 2-D lane-dense tile.
    for b in range(bb):
        x = x_ref[b]                                       # (C, N) native dtype

        # AdaptiveAvgPool2d(1): lane reduce with f32 accumulation (the cast
        # only feeds the reduce; it is a no-op for f32 inputs).
        avg_x = jnp.sum(x.astype(jnp.float32), axis=-1,
                        keepdims=True) * inv_n             # (C, 1) f32

        # fc1 (1x1 conv, no bias) + ReLU, accumulated in f32.
        if use_vpu_fc1:
            # Tiny C: an unrolled chain of broadcast multiply-adds on the VPU
            # beats a K=C systolic pass that wastes >96% of the MXU.
            feat = w1[:, 0:1] * x[0:1, :]                  # (D, N) f32
            avg_vec = w1[:, 0:1] * avg_x[0:1, :]           # (D, 1) f32
            for c in range(1, C):
                feat = feat + w1[:, c:c + 1] * x[c:c + 1, :]
                avg_vec = avg_vec + w1[:, c:c + 1] * avg_x[c:c + 1, :]
        else:
            # Production-sized C (ResNet: 256-2048): MXU with f32 accumulate.
            # x is fed in its native dtype (bf16 callers halve HBM traffic).
            feat = jnp.dot(w1.astype(x.dtype), x,
                           preferred_element_type=jnp.float32)      # (D, N)
            avg_vec = jnp.dot(w1, avg_x,
                              preferred_element_type=jnp.float32)   # (D, 1)
        feat = jnp.maximum(feat, 0.0)
        avg_vec = jnp.maximum(avg_vec, 0.0)

        # LayerNorm over the attention dim D (small cross-sublane reduce).
        feat_n = layer_norm(feat)                          # (D, N)
        cls_n = layer_norm(avg_vec)                        # (D, 1)

        # attn = softmax_N(scale * <cls_n, feat_n>_D); lane-dense throughout.
        logits = jnp.sum(cls_n * feat_n, axis=0, keepdims=True) * scale  # (1,N)
        m = jnp.max(logits, axis=-1, keepdims=True)
        e = jnp.exp(logits - m)
        # Exact normalization: the [1, N] divide is negligible here and keeps
        # softmax rows summing to 1 (matches the PyTorch reference tightly).
        attn = e / jnp.sum(e, axis=-1, keepdims=True)      # (1, N) f32

        # Final modulation in x's native dtype: the tiny attn row is cast down
        # once instead of materializing a full-tile f32 copy of x.
        out_ref[b] = (attn.astype(x.dtype) * x).astype(out_ref.dtype)
        attn_ref[b] = attn.astype(attn_ref.dtype)
        # fc2(avg_vector) on the pre-norm ReLU'd vector: sublane reduce over D.
        avg_out_ref[b] = jnp.sum(avg_vec * w2t, axis=0,
                                 keepdims=True).astype(avg_out_ref.dtype)


def cnn_attention(x_nchw, w1, w2, gamma, beta, *, eps=1e-5):
    """x_nchw: [B, C, H, W]; w1: [D, C] (fc1 conv weight squeezed);
    w2: [C, D] (fc2 conv weight squeezed); gamma/beta: [D]."""
    B, C, H, W = x_nchw.shape
    D = w1.shape[0]
    N = H * W
    scale = float(D) ** (-0.5)
    isz = x_nchw.dtype.itemsize

    # Pure reshape (no transpose): NCHW -> [B, C, N]; N lands on the lane axis.
    x = x_nchw.reshape(B, C, N)
    w1f = w1.astype(jnp.float32)
    w2t = jnp.transpose(w2).astype(jnp.float32)     # [D, C]
    gamma2 = gamma.reshape(D, 1).astype(jnp.float32)
    beta2 = beta.reshape(D, 1).astype(jnp.float32)

    # --- block sizing -------------------------------------------------------
    # HBM-bound kernel (~D/4 flop/byte): one [C, N] block per batch element is
    # the minimum-traffic plan and fits VMEM on every generation, even v7x.
    # Tiny problems (whole batch <= 1 MiB) are folded into a single grid step
    # so the per-step overhead is paid once on single-TC v5e/v6e; big problems
    # keep grid=(B,) "parallel" so v7x megacore shards over batch.
    # TODO(synk): only if bb*C*N*itemsize ever exceeded ~8 MiB per buffer would
    # an N-tiled 'arbitrary' axis with a resident [1,N] logits scratch be
    # needed; ResNet-sized inputs never get there.
    per_batch_bytes = C * N * isz
    bb = B if (B * per_batch_bytes <= (1 << 20)) else 1
    grid = (B // bb,)                                # bb is B or 1: divides

    kernel = partial(cnn_attention_kernel, scale=scale, eps=eps,
                     use_vpu_fc1=(C <= 16))

    # Footprint: double-buffered in/out x blocks + small outputs + weights +
    # f32 intermediates (feat / feat_n).  Clamped under v7x's 64 MiB physical.
    need = (4 * bb * per_batch_bytes                 # x in + out, double-buf
            + 2 * bb * (N + C) * isz                 # attn + avg outputs
            + 4 * D * (C + 1) * 4                    # weights + LN params
            + 4 * D * N * 4                          # f32 intermediates
            + (2 << 20))                             # slack
    vmem_limit = int(min(max(need, 32 << 20), 56 << 20))

    cost = pl.CostEstimate(
        flops=2 * B * D * C * (N + 1) + 12 * B * D * N,
        transcendentals=B * (N + D),
        bytes_accessed=(2 * B * C * N + B * (N + C)) * isz + 2 * D * C * 4,
    )

    out, avg_out, attn = pl.pallas_call(
        kernel,
        out_shape=(
            jax.ShapeDtypeStruct((B, C, N), x.dtype),   # attn * x
            jax.ShapeDtypeStruct((B, 1, C), x.dtype),   # fc2(avg_vector)
            jax.ShapeDtypeStruct((B, 1, N), x.dtype),   # attn map (lane-dense)
        ),
        grid=grid,
        in_specs=[
            pl.BlockSpec((bb, C, N), lambda i: (i, 0, 0)),
            pl.BlockSpec((D, C), lambda i: (0, 0)),
            pl.BlockSpec((D, C), lambda i: (0, 0)),
            pl.BlockSpec((D, 1), lambda i: (0, 0)),
            pl.BlockSpec((D, 1), lambda i: (0, 0)),
        ],
        out_specs=[
            pl.BlockSpec((bb, C, N), lambda i: (i, 0, 0)),
            pl.BlockSpec((bb, 1, C), lambda i: (i, 0, 0)),
            pl.BlockSpec((bb, 1, N), lambda i: (i, 0, 0)),
        ],
        compiler_params=pltpu.CompilerParams(
            dimension_semantics=("parallel",),
            vmem_limit_bytes=vmem_limit),
        cost_estimate=cost,
    )(x, w1f, w2t, gamma2, beta2)

    out_nchw = out.reshape(B, C, H, W)      # pure reshape back to NCHW
    avg_out_flat = avg_out.reshape(B, C)    # [B, C]
    attn_map = attn.reshape(B, 1, H, W)     # [B, 1, H, W]
    return out_nchw, avg_out_flat, attn_map


def reference(x_nchw, w1, w2, gamma, beta, *, eps=1e-5):
    """Pure-JAX reference matching the PyTorch module exactly."""
    B, C, H, W = x_nchw.shape
    D = w1.shape[0]
    scale = float(D) ** (-0.5)
    avg = jnp.mean(x_nchw, axis=(2, 3))                  # [B, C]
    avg_vec = jnp.maximum(avg @ w1.T, 0.0)               # [B, D]
    x_flat = jnp.transpose(x_nchw, (0, 2, 3, 1)).reshape(B, H * W, C)
    feat = jnp.maximum(x_flat @ w1.T, 0.0)               # [B, N, D]

    def ln(v):
        mu = v.mean(-1, keepdims=True)
        var = ((v - mu) ** 2).mean(-1, keepdims=True)
        return (v - mu) / jnp.sqrt(var + eps) * gamma + beta

    feat_n = ln(feat)
    cls_n = ln(avg_vec)
    logits = jnp.einsum("bd,bnd->bn", cls_n, feat_n) * scale
    attn = jax.nn.softmax(logits, axis=-1)               # [B, N]
    attn_map = attn.reshape(B, 1, H, W)
    return attn_map * x_nchw, avg_vec @ w2.T, attn_map


if __name__ == "__main__":
    B, C, H, W = 2, 4, 16, 16   # small input [B, in_channels, in_size, in_size]
    D = 32                      # attn_dim

    key = jax.random.PRNGKey(0)
    kx, k1, k2 = jax.random.split(key, 3)
    x = jax.random.normal(kx, (B, C, H, W), jnp.float32)
    # fc1.weight: [attn_dim, in_channels, 1, 1] -> squeezed [D, C]
    w1 = jax.random.normal(k1, (D, C), jnp.float32) * 0.1
    # fc2.weight: [in_channels, attn_dim, 1, 1] -> squeezed [C, D]
    w2 = jax.random.normal(k2, (C, D), jnp.float32) * 0.1
    # LayerNorm(attn_dim) default init: weight=1, bias=0
    gamma = jnp.ones((D,), jnp.float32)
    beta = jnp.zeros((D,), jnp.float32)

    out, avg_out, attn = cnn_attention(x, w1, w2, gamma, beta)
    jax.block_until_ready((out, avg_out, attn))

    ref_out, ref_avg, ref_attn = reference(x, w1, w2, gamma, beta)
    # Exact softmax normalization -> tight tolerances (only reduce-order /
    # rsqrt-vs-sqrt level differences remain).
    assert jnp.allclose(out, ref_out, atol=1e-5, rtol=1e-4)
    assert jnp.allclose(avg_out, ref_avg, atol=1e-5, rtol=1e-5)
    assert jnp.allclose(attn, ref_attn, atol=1e-6, rtol=1e-4)

    print("KERNEL_OK")
</pallas_src>

<mosaic_0001>
module attributes {stable_mosaic.version = 11 : i64} {
  func.func @cnn_attention_kernel(%arg0: i32, %arg1: memref<2x4x256xf32, #tpu.memory_space<vmem>>, %arg2: memref<32x4xf32, #tpu.memory_space<vmem>>, %arg3: memref<32x4xf32, #tpu.memory_space<vmem>>, %arg4: memref<32x1xf32, #tpu.memory_space<vmem>>, %arg5: memref<32x1xf32, #tpu.memory_space<vmem>>, %arg6: memref<2x4x256xf32, #tpu.memory_space<vmem>>, %arg7: memref<2x1x4xf32, #tpu.memory_space<vmem>>, %arg8: memref<2x1x256xf32, #tpu.memory_space<vmem>>) attributes {dimension_semantics = [#tpu.dimension_semantics<parallel>], iteration_bounds = array<i64: 1>, scalar_prefetch = 0 : i64, scratch_operands = 0 : i64, tpu.core_type = #tpu.core_type<tc>, window_params = [{transform_indices = @transform_0, window_bounds = array<i64: 2, 4, 256>}, {pipeline_mode = #tpu.pipeline_mode<synchronous>, transform_indices = @transform_1, window_bounds = array<i64: 32, 4>}, {pipeline_mode = #tpu.pipeline_mode<synchronous>, transform_indices = @transform_2, window_bounds = array<i64: 32, 4>}, {pipeline_mode = #tpu.pipeline_mode<synchronous>, transform_indices = @transform_3, window_bounds = array<i64: 32, 1>}, {pipeline_mode = #tpu.pipeline_mode<synchronous>, transform_indices = @transform_4, window_bounds = array<i64: 32, 1>}, {transform_indices = @transform_5, window_bounds = array<i64: 2, 4, 256>}, {transform_indices = @transform_6, window_bounds = array<i64: 2, 1, 4>}, {transform_indices = @transform_7, window_bounds = array<i64: 2, 1, 256>}]} {
    %c0 = arith.constant 0 : index
    %c0_0 = arith.constant 0 : index
    %0 = vector.load %arg2[%c0, %c0_0] : memref<32x4xf32, #tpu.memory_space<vmem>>, vector<32x4xf32>
    %c0_1 = arith.constant 0 : index
    %c0_2 = arith.constant 0 : index
    %1 = vector.load %arg3[%c0_1, %c0_2] : memref<32x4xf32, #tpu.memory_space<vmem>>, vector<32x4xf32>
    %c0_3 = arith.constant 0 : index
    %c0_4 = arith.constant 0 : index
    %2 = vector.load %arg4[%c0_3, %c0_4] : memref<32x1xf32, #tpu.memory_space<vmem>>, vector<32x1xf32>
    %c0_5 = arith.constant 0 : index
    %c0_6 = arith.constant 0 : index
    %3 = vector.load %arg5[%c0_5, %c0_6] : memref<32x1xf32, #tpu.memory_space<vmem>>, vector<32x1xf32>
    %c0_7 = arith.constant 0 : index
    %c0_8 = arith.constant 0 : index
    %c0_9 = arith.constant 0 : index
    %4 = vector.load %arg1[%c0_7, %c0_8, %c0_9] : memref<2x4x256xf32, #tpu.memory_space<vmem>>, vector<1x4x256xf32>
    %5 = vector.shape_cast %4 : vector<1x4x256xf32> to vector<4x256xf32>
    %cst = arith.constant dense<0.000000e+00> : vector<4xf32>
    %6 = vector.multi_reduction <add>, %5, %cst [1] : vector<4x256xf32> to vector<4xf32>
    %7 = vector.shape_cast %6 : vector<4xf32> to vector<4x1xf32>
    %cst_10 = arith.constant 3.906250e-03 : f32
    %8 = vector.broadcast %cst_10 : f32 to vector<4x1xf32>
    %9 = arith.mulf %7, %8 : vector<4x1xf32>
    %10 = vector.extract_strided_slice %0 {offsets = [0, 0], sizes = [32, 1], strides = [1, 1]} : vector<32x4xf32> to vector<32x1xf32>
    %11 = vector.extract_strided_slice %5 {offsets = [0, 0], sizes = [1, 256], strides = [1, 1]} : vector<4x256xf32> to vector<1x256xf32>
    %12 = vector.broadcast %10 : vector<32x1xf32> to vector<32x256xf32>
    %13 = vector.broadcast %11 : vector<1x256xf32> to vector<32x256xf32>
    %14 = arith.mulf %12, %13 : vector<32x256xf32>
    %15 = vector.extract_strided_slice %0 {offsets = [0, 0], sizes = [32, 1], strides = [1, 1]} : vector<32x4xf32> to vector<32x1xf32>
    %16 = vector.extract_strided_slice %9 {offsets = [0, 0], sizes = [1, 1], strides = [1, 1]} : vector<4x1xf32> to vector<1x1xf32>
    %17 = vector.broadcast %16 : vector<1x1xf32> to vector<32x1xf32>
    %18 = arith.mulf %15, %17 : vector<32x1xf32>
    %19 = vector.extract_strided_slice %0 {offsets = [0, 1], sizes = [32, 1], strides = [1, 1]} : vector<32x4xf32> to vector<32x1xf32>
    %20 = vector.extract_strided_slice %5 {offsets = [1, 0], sizes = [1, 256], strides = [1, 1]} : vector<4x256xf32> to vector<1x256xf32>
    %21 = vector.broadcast %19 : vector<32x1xf32> to vector<32x256xf32>
    %22 = vector.broadcast %20 : vector<1x256xf32> to vector<32x256xf32>
    %23 = arith.mulf %21, %22 : vector<32x256xf32>
    %24 = arith.addf %14, %23 : vector<32x256xf32>
    %25 = vector.extract_strided_slice %0 {offsets = [0, 1], sizes = [32, 1], strides = [1, 1]} : vector<32x4xf32> to vector<32x1xf32>
    %26 = vector.extract_strided_slice %9 {offsets = [1, 0], sizes = [1, 1], strides = [1, 1]} : vector<4x1xf32> to vector<1x1xf32>
    %27 = vector.broadcast %26 : vector<1x1xf32> to vector<32x1xf32>
    %28 = arith.mulf %25, %27 : vector<32x1xf32>
    %29 = arith.addf %18, %28 : vector<32x1xf32>
    %30 = vector.extract_strided_slice %0 {offsets = [0, 2], sizes = [32, 1], strides = [1, 1]} : vector<32x4xf32> to vector<32x1xf32>
    %31 = vector.extract_strided_slice %5 {offsets = [2, 0], sizes = [1, 256], strides = [1, 1]} : vector<4x256xf32> to vector<1x256xf32>
    %32 = vector.broadcast %30 : vector<32x1xf32> to vector<32x256xf32>
    %33 = vector.broadcast %31 : vector<1x256xf32> to vector<32x256xf32>
    %34 = arith.mulf %32, %33 : vector<32x256xf32>
    %35 = arith.addf %24, %34 : vector<32x256xf32>
    %36 = vector.extract_strided_slice %0 {offsets = [0, 2], sizes = [32, 1], strides = [1, 1]} : vector<32x4xf32> to vector<32x1xf32>
    %37 = vector.extract_strided_slice %9 {offsets = [2, 0], sizes = [1, 1], strides = [1, 1]} : vector<4x1xf32> to vector<1x1xf32>
    %38 = vector.broadcast %37 : vector<1x1xf32> to vector<32x1xf32>
    %39 = arith.mulf %36, %38 : vector<32x1xf32>
    %40 = arith.addf %29, %39 : vector<32x1xf32>
    %41 = vector.extract_strided_slice %0 {offsets = [0, 3], sizes = [32, 1], strides = [1, 1]} : vector<32x4xf32> to vector<32x1xf32>
    %42 = vector.extract_strided_slice %5 {offsets = [3, 0], sizes = [1, 256], strides = [1, 1]} : vector<4x256xf32> to vector<1x256xf32>
    %43 = vector.broadcast %41 : vector<32x1xf32> to vector<32x256xf32>
    %44 = vector.broadcast %42 : vector<1x256xf32> to vector<32x256xf32>
    %45 = arith.mulf %43, %44 : vector<32x256xf32>
    %46 = arith.addf %35, %45 : vector<32x256xf32>
    %47 = vector.extract_strided_slice %0 {offsets = [0, 3], sizes = [32, 1], strides = [1, 1]} : vector<32x4xf32> to vector<32x1xf32>
    %48 = vector.extract_strided_slice %9 {offsets = [3, 0], sizes = [1, 1], strides = [1, 1]} : vector<4x1xf32> to vector<1x1xf32>
    %49 = vector.broadcast %48 : vector<1x1xf32> to vector<32x1xf32>
    %50 = arith.mulf %47, %49 : vector<32x1xf32>
    %51 = arith.addf %40, %50 : vector<32x1xf32>
    %cst_11 = arith.constant 0.000000e+00 : f32
    %52 = vector.broadcast %cst_11 : f32 to vector<32x256xf32>
    %53 = arith.maximumf %46, %52 : vector<32x256xf32>
    %cst_12 = arith.constant 0.000000e+00 : f32
    %54 = vector.broadcast %cst_12 : f32 to vector<32x1xf32>
    %55 = arith.maximumf %51, %54 : vector<32x1xf32>
    %cst_13 = arith.constant dense<0.000000e+00> : vector<256xf32>
    %56 = vector.multi_reduction <add>, %53, %cst_13 [0] : vector<32x256xf32> to vector<256xf32>
    %57 = vector.shape_cast %56 : vector<256xf32> to vector<1x256xf32>
    %58 = arith.mulf %53, %53 : vector<32x256xf32>
    %cst_14 = arith.constant dense<0.000000e+00> : vector<256xf32>
    %59 = vector.multi_reduction <add>, %58, %cst_14 [0] : vector<32x256xf32> to vector<256xf32>
    %60 = vector.shape_cast %59 : vector<256xf32> to vector<1x256xf32>
    %cst_15 = arith.constant 3.125000e-02 : f32
    %61 = vector.broadcast %cst_15 : f32 to vector<1x256xf32>
    %62 = arith.mulf %57, %61 : vector<1x256xf32>
    %cst_16 = arith.constant 3.125000e-02 : f32
    %63 = vector.broadcast %cst_16 : f32 to vector<1x256xf32>
    %64 = arith.mulf %60, %63 : vector<1x256xf32>
    %65 = arith.mulf %62, %62 : vector<1x256xf32>
    %66 = arith.subf %64, %65 : vector<1x256xf32>
    %cst_17 = arith.constant 0.000000e+00 : f32
    %67 = vector.broadcast %cst_17 : f32 to vector<1x256xf32>
    %68 = arith.maximumf %66, %67 : vector<1x256xf32>
    %69 = vector.broadcast %62 : vector<1x256xf32> to vector<32x256xf32>
    %70 = arith.subf %53, %69 : vector<32x256xf32>
    %cst_18 = arith.constant 9.99999974E-6 : f32
    %71 = vector.broadcast %cst_18 : f32 to vector<1x256xf32>
    %72 = arith.addf %68, %71 : vector<1x256xf32>
    %73 = math.rsqrt %72 : vector<1x256xf32>
    %74 = vector.broadcast %73 : vector<1x256xf32> to vector<32x256xf32>
    %75 = arith.mulf %70, %74 : vector<32x256xf32>
    %76 = vector.broadcast %2 : vector<32x1xf32> to vector<32x256xf32>
    %77 = arith.mulf %75, %76 : vector<32x256xf32>
    %78 = vector.broadcast %3 : vector<32x1xf32> to vector<32x256xf32>
    %79 = arith.addf %77, %78 : vector<32x256xf32>
    %cst_19 = arith.constant dense<0.000000e+00> : vector<1xf32>
    %80 = vector.multi_reduction <add>, %55, %cst_19 [0] : vector<32x1xf32> to vector<1xf32>
    %81 = vector.shape_cast %80 : vector<1xf32> to vector<1x1xf32>
    %82 = arith.mulf %55, %55 : vector<32x1xf32>
    %cst_20 = arith.constant dense<0.000000e+00> : vector<1xf32>
    %83 = vector.multi_reduction <add>, %82, %cst_20 [0] : vector<32x1xf32> to vector<1xf32>
    %84 = vector.shape_cast %83 : vector<1xf32> to vector<1x1xf32>
    %cst_21 = arith.constant 3.125000e-02 : f32
    %85 = vector.broadcast %cst_21 : f32 to vector<1x1xf32>
    %86 = arith.mulf %81, %85 : vector<1x1xf32>
    %cst_22 = arith.constant 3.125000e-02 : f32
    %87 = vector.broadcast %cst_22 : f32 to vector<1x1xf32>
    %88 = arith.mulf %84, %87 : vector<1x1xf32>
    %89 = arith.mulf %86, %86 : vector<1x1xf32>
    %90 = arith.subf %88, %89 : vector<1x1xf32>
    %cst_23 = arith.constant 0.000000e+00 : f32
    %91 = vector.broadcast %cst_23 : f32 to vector<1x1xf32>
    %92 = arith.maximumf %90, %91 : vector<1x1xf32>
    %93 = vector.broadcast %86 : vector<1x1xf32> to vector<32x1xf32>
    %94 = arith.subf %55, %93 : vector<32x1xf32>
    %cst_24 = arith.constant 9.99999974E-6 : f32
    %95 = vector.broadcast %cst_24 : f32 to vector<1x1xf32>
    %96 = arith.addf %92, %95 : vector<1x1xf32>
    %97 = math.rsqrt %96 : vector<1x1xf32>
    %98 = vector.broadcast %97 : vector<1x1xf32> to vector<32x1xf32>
    %99 = arith.mulf %94, %98 : vector<32x1xf32>
    %100 = arith.mulf %99, %2 : vector<32x1xf32>
    %101 = arith.addf %100, %3 : vector<32x1xf32>
    %102 = vector.broadcast %101 : vector<32x1xf32> to vector<32x256xf32>
    %103 = arith.mulf %102, %79 : vector<32x256xf32>
    %cst_25 = arith.constant dense<0.000000e+00> : vector<256xf32>
    %104 = vector.multi_reduction <add>, %103, %cst_25 [0] : vector<32x256xf32> to vector<256xf32>
    %105 = vector.shape_cast %104 : vector<256xf32> to vector<1x256xf32>
    %cst_26 = arith.constant 0.176776692 : f32
    %106 = vector.broadcast %cst_26 : f32 to vector<1x256xf32>
    %107 = arith.mulf %105, %106 : vector<1x256xf32>
    %cst_27 = arith.constant dense<0xFF800000> : vector<1xf32>
    %108 = vector.multi_reduction <maximumf>, %107, %cst_27 [1] : vector<1x256xf32> to vector<1xf32>
    %109 = vector.shape_cast %108 : vector<1xf32> to vector<1x1xf32>
    %110 = vector.broadcast %109 : vector<1x1xf32> to vector<1x256xf32>
    %111 = arith.subf %107, %110 : vector<1x256xf32>
    %112 = math.exp %111 : vector<1x256xf32>
    %cst_28 = arith.constant dense<0.000000e+00> : vector<1xf32>
    %113 = vector.multi_reduction <add>, %112, %cst_28 [1] : vector<1x256xf32> to vector<1xf32>
    %114 = vector.shape_cast %113 : vector<1xf32> to vector<1x1xf32>
    %115 = vector.broadcast %114 : vector<1x1xf32> to vector<1x256xf32>
    %116 = arith.divf %112, %115 : vector<1x256xf32>
    %117 = vector.broadcast %116 : vector<1x256xf32> to vector<4x256xf32>
    %118 = arith.mulf %117, %5 : vector<4x256xf32>
    %c0_29 = arith.constant 0 : index
    %c0_30 = arith.constant 0 : index
    %c0_31 = arith.constant 0 : index
    %119 = vector.load %arg6[%c0_29, %c0_30, %c0_31] : memref<2x4x256xf32, #tpu.memory_space<vmem>>, vector<1x4x256xf32>
    %120 = vector.shape_cast %119 : vector<1x4x256xf32> to vector<4x256xf32>
    %121 = vector.shape_cast %118 : vector<4x256xf32> to vector<1x4x256xf32>
    tpu.vector_store %arg6[%c0_29, %c0_30, %c0_31], %121 {strides = array<i32>} : memref<2x4x256xf32, #tpu.memory_space<vmem>>, vector<1x4x256xf32>,
    %c0_32 = arith.constant 0 : index
    %c0_33 = arith.constant 0 : index
    %c0_34 = arith.constant 0 : index
    %122 = vector.load %arg8[%c0_32, %c0_33, %c0_34] : memref<2x1x256xf32, #tpu.memory_space<vmem>>, vector<1x1x256xf32>
    %123 = vector.shape_cast %122 : vector<1x1x256xf32> to vector<1x256xf32>
    %124 = vector.shape_cast %116 : vector<1x256xf32> to vector<1x1x256xf32>
    tpu.vector_store %arg8[%c0_32, %c0_33, %c0_34], %124 {strides = array<i32>} : memref<2x1x256xf32, #tpu.memory_space<vmem>>, vector<1x1x256xf32>,
    %125 = vector.broadcast %55 : vector<32x1xf32> to vector<32x4xf32>
    %126 = arith.mulf %125, %1 : vector<32x4xf32>
    %cst_35 = arith.constant dense<0.000000e+00> : vector<4xf32>
    %127 = vector.multi_reduction <add>, %126, %cst_35 [0] : vector<32x4xf32> to vector<4xf32>
    %128 = vector.shape_cast %127 : vector<4xf32> to vector<1x4xf32>
    %c0_36 = arith.constant 0 : index
    %c0_37 = arith.constant 0 : index
    %c0_38 = arith.constant 0 : index
    %129 = vector.load %arg7[%c0_36, %c0_37, %c0_38] : memref<2x1x4xf32, #tpu.memory_space<vmem>>, vector<1x1x4xf32>
    %130 = vector.shape_cast %129 : vector<1x1x4xf32> to vector<1x4xf32>
    %131 = vector.shape_cast %128 : vector<1x4xf32> to vector<1x1x4xf32>
    tpu.vector_store %arg7[%c0_36, %c0_37, %c0_38], %131 {strides = array<i32>} : memref<2x1x4xf32, #tpu.memory_space<vmem>>, vector<1x1x4xf32>,
    %c1 = arith.constant 1 : index
    %c0_39 = arith.constant 0 : index
    %c0_40 = arith.constant 0 : index
    %132 = vector.load %arg1[%c1, %c0_39, %c0_40] : memref<2x4x256xf32, #tpu.memory_space<vmem>>, vector<1x4x256xf32>
    %133 = vector.shape_cast %132 : vector<1x4x256xf32> to vector<4x256xf32>
    %cst_41 = arith.constant dense<0.000000e+00> : vector<4xf32>
    %134 = vector.multi_reduction <add>, %133, %cst_41 [1] : vector<4x256xf32> to vector<4xf32>
    %135 = vector.shape_cast %134 : vector<4xf32> to vector<4x1xf32>
    %cst_42 = arith.constant 3.906250e-03 : f32
    %136 = vector.broadcast %cst_42 : f32 to vector<4x1xf32>
    %137 = arith.mulf %135, %136 : vector<4x1xf32>
    %138 = vector.extract_strided_slice %0 {offsets = [0, 0], sizes = [32, 1], strides = [1, 1]} : vector<32x4xf32> to vector<32x1xf32>
    %139 = vector.extract_strided_slice %133 {offsets = [0, 0], sizes = [1, 256], strides = [1, 1]} : vector<4x256xf32> to vector<1x256xf32>
    %140 = vector.broadcast %138 : vector<32x1xf32> to vector<32x256xf32>
    %141 = vector.broadcast %139 : vector<1x256xf32> to vector<32x256xf32>
    %142 = arith.mulf %140, %141 : vector<32x256xf32>
    %143 = vector.extract_strided_slice %0 {offsets = [0, 0], sizes = [32, 1], strides = [1, 1]} : vector<32x4xf32> to vector<32x1xf32>
    %144 = vector.extract_strided_slice %137 {offsets = [0, 0], sizes = [1, 1], strides = [1, 1]} : vector<4x1xf32> to vector<1x1xf32>
    %145 = vector.broadcast %144 : vector<1x1xf32> to vector<32x1xf32>
    %146 = arith.mulf %143, %145 : vector<32x1xf32>
    %147 = vector.extract_strided_slice %0 {offsets = [0, 1], sizes = [32, 1], strides = [1, 1]} : vector<32x4xf32> to vector<32x1xf32>
    %148 = vector.extract_strided_slice %133 {offsets = [1, 0], sizes = [1, 256], strides = [1, 1]} : vector<4x256xf32> to vector<1x256xf32>
    %149 = vector.broadcast %147 : vector<32x1xf32> to vector<32x256xf32>
    %150 = vector.broadcast %148 : vector<1x256xf32> to vector<32x256xf32>
    %151 = arith.mulf %149, %150 : vector<32x256xf32>
    %152 = arith.addf %142, %151 : vector<32x256xf32>
    %153 = vector.extract_strided_slice %0 {offsets = [0, 1], sizes = [32, 1], strides = [1, 1]} : vector<32x4xf32> to vector<32x1xf32>
    %154 = vector.extract_strided_slice %137 {offsets = [1, 0], sizes = [1, 1], strides = [1, 1]} : vector<4x1xf32> to vector<1x1xf32>
    %155 = vector.broadcast %154 : vector<1x1xf32> to vector<32x1xf32>
    %156 = arith.mulf %153, %155 : vector<32x1xf32>
    %157 = arith.addf %146, %156 : vector<32x1xf32>
    %158 = vector.extract_strided_slice %0 {offsets = [0, 2], sizes = [32, 1], strides = [1, 1]} : vector<32x4xf32> to vector<32x1xf32>
    %159 = vector.extract_strided_slice %133 {offsets = [2, 0], sizes = [1, 256], strides = [1, 1]} : vector<4x256xf32> to vector<1x256xf32>
    %160 = vector.broadcast %158 : vector<32x1xf32> to vector<32x256xf32>
    %161 = vector.broadcast %159 : vector<1x256xf32> to vector<32x256xf32>
    %162 = arith.mulf %160, %161 : vector<32x256xf32>
    %163 = arith.addf %152, %162 : vector<32x256xf32>
    %164 = vector.extract_strided_slice %0 {offsets = [0, 2], sizes = [32, 1], strides = [1, 1]} : vector<32x4xf32> to vector<32x1xf32>
    %165 = vector.extract_strided_slice %137 {offsets = [2, 0], sizes = [1, 1], strides = [1, 1]} : vector<4x1xf32> to vector<1x1xf32>
    %166 = vector.broadcast %165 : vector<1x1xf32> to vector<32x1xf32>
    %167 = arith.mulf %164, %166 : vector<32x1xf32>
    %168 = arith.addf %157, %167 : vector<32x1xf32>
    %169 = vector.extract_strided_slice %0 {offsets = [0, 3], sizes = [32, 1], strides = [1, 1]} : vector<32x4xf32> to vector<32x1xf32>
    %170 = vector.extract_strided_slice %133 {offsets = [3, 0], sizes = [1, 256], strides = [1, 1]} : vector<4x256xf32> to vector<1x256xf32>
    %171 = vector.broadcast %169 : vector<32x1xf32> to vector<32x256xf32>
    %172 = vector.broadcast %170 : vector<1x256xf32> to vector<32x256xf32>
    %173 = arith.mulf %171, %172 : vector<32x256xf32>
    %174 = arith.addf %163, %173 : vector<32x256xf32>
    %175 = vector.extract_strided_slice %0 {offsets = [0, 3], sizes = [32, 1], strides = [1, 1]} : vector<32x4xf32> to vector<32x1xf32>
    %176 = vector.extract_strided_slice %137 {offsets = [3, 0], sizes = [1, 1], strides = [1, 1]} : vector<4x1xf32> to vector<1x1xf32>
    %177 = vector.broadcast %176 : vector<1x1xf32> to vector<32x1xf32>
    %178 = arith.mulf %175, %177 : vector<32x1xf32>
    %179 = arith.addf %168, %178 : vector<32x1xf32>
    %cst_43 = arith.constant 0.000000e+00 : f32
    %180 = vector.broadcast %cst_43 : f32 to vector<32x256xf32>
    %181 = arith.maximumf %174, %180 : vector<32x256xf32>
    %cst_44 = arith.constant 0.000000e+00 : f32
    %182 = vector.broadcast %cst_44 : f32 to vector<32x1xf32>
    %183 = arith.maximumf %179, %182 : vector<32x1xf32>
    %cst_45 = arith.constant dense<0.000000e+00> : vector<256xf32>
    %184 = vector.multi_reduction <add>, %181, %cst_45 [0] : vector<32x256xf32> to vector<256xf32>
    %185 = vector.shape_cast %184 : vector<256xf32> to vector<1x256xf32>
    %186 = arith.mulf %181, %181 : vector<32x256xf32>
    %cst_46 = arith.constant dense<0.000000e+00> : vector<256xf32>
    %187 = vector.multi_reduction <add>, %186, %cst_46 [0] : vector<32x256xf32> to vector<256xf32>
    %188 = vector.shape_cast %187 : vector<256xf32> to vector<1x256xf32>
    %cst_47 = arith.constant 3.125000e-02 : f32
    %189 = vector.broadcast %cst_47 : f32 to vector<1x256xf32>
    %190 = arith.mulf %185, %189 : vector<1x256xf32>
    %cst_48 = arith.constant 3.125000e-02 : f32
    %191 = vector.broadcast %cst_48 : f32 to vector<1x256xf32>
    %192 = arith.mulf %188, %191 : vector<1x256xf32>
    %193 = arith.mulf %190, %190 : vector<1x256xf32>
    %194 = arith.subf %192, %193 : vector<1x256xf32>
    %cst_49 = arith.constant 0.000000e+00 : f32
    %195 = vector.broadcast %cst_49 : f32 to vector<1x256xf32>
    %196 = arith.maximumf %194, %195 : vector<1x256xf32>
    %197 = vector.broadcast %190 : vector<1x256xf32> to vector<32x256xf32>
    %198 = arith.subf %181, %197 : vector<32x256xf32>
    %cst_50 = arith.constant 9.99999974E-6 : f32
    %199 = vector.broadcast %cst_50 : f32 to vector<1x256xf32>
    %200 = arith.addf %196, %199 : vector<1x256xf32>
    %201 = math.rsqrt %200 : vector<1x256xf32>
    %202 = vector.broadcast %201 : vector<1x256xf32> to vector<32x256xf32>
    %203 = arith.mulf %198, %202 : vector<32x256xf32>
    %204 = vector.broadcast %2 : vector<32x1xf32> to vector<32x256xf32>
    %205 = arith.mulf %203, %204 : vector<32x256xf32>
    %206 = vector.broadcast %3 : vector<32x1xf32> to vector<32x256xf32>
    %207 = arith.addf %205, %206 : vector<32x256xf32>
    %cst_51 = arith.constant dense<0.000000e+00> : vector<1xf32>
    %208 = vector.multi_reduction <add>, %183, %cst_51 [0] : vector<32x1xf32> to vector<1xf32>
    %209 = vector.shape_cast %208 : vector<1xf32> to vector<1x1xf32>
    %210 = arith.mulf %183, %183 : vector<32x1xf32>
    %cst_52 = arith.constant dense<0.000000e+00> : vector<1xf32>
    %211 = vector.multi_reduction <add>, %210, %cst_52 [0] : vector<32x1xf32> to vector<1xf32>
    %212 = vector.shape_cast %211 : vector<1xf32> to vector<1x1xf32>
    %cst_53 = arith.constant 3.125000e-02 : f32
    %213 = vector.broadcast %cst_53 : f32 to vector<1x1xf32>
    %214 = arith.mulf %209, %213 : vector<1x1xf32>
    %cst_54 = arith.constant 3.125000e-02 : f32
    %215 = vector.broadcast %cst_54 : f32 to vector<1x1xf32>
    %216 = arith.mulf %212, %215 : vector<1x1xf32>
    %217 = arith.mulf %214, %214 : vector<1x1xf32>
    %218 = arith.subf %216, %217 : vector<1x1xf32>
    %cst_55 = arith.constant 0.000000e+00 : f32
    %219 = vector.broadcast %cst_55 : f32 to vector<1x1xf32>
    %220 = arith.maximumf %218, %219 : vector<1x1xf32>
    %221 = vector.broadcast %214 : vector<1x1xf32> to vector<32x1xf32>
    %222 = arith.subf %183, %221 : vector<32x1xf32>
    %cst_56 = arith.constant 9.99999974E-6 : f32
    %223 = vector.broadcast %cst_56 : f32 to vector<1x1xf32>
    %224 = arith.addf %220, %223 : vector<1x1xf32>
    %225 = math.rsqrt %224 : vector<1x1xf32>
    %226 = vector.broadcast %225 : vector<1x1xf32> to vector<32x1xf32>
    %227 = arith.mulf %222, %226 : vector<32x1xf32>
    %228 = arith.mulf %227, %2 : vector<32x1xf32>
    %229 = arith.addf %228, %3 : vector<32x1xf32>
    %230 = vector.broadcast %229 : vector<32x1xf32> to vector<32x256xf32>
    %231 = arith.mulf %230, %207 : vector<32x256xf32>
    %cst_57 = arith.constant dense<0.000000e+00> : vector<256xf32>
    %232 = vector.multi_reduction <add>, %231, %cst_57 [0] : vector<32x256xf32> to vector<256xf32>
    %233 = vector.shape_cast %232 : vector<256xf32> to vector<1x256xf32>
    %cst_58 = arith.constant 0.176776692 : f32
    %234 = vector.broadcast %cst_58 : f32 to vector<1x256xf32>
    %235 = arith.mulf %233, %234 : vector<1x256xf32>
    %cst_59 = arith.constant dense<0xFF800000> : vector<1xf32>
    %236 = vector.multi_reduction <maximumf>, %235, %cst_59 [1] : vector<1x256xf32> to vector<1xf32>
    %237 = vector.shape_cast %236 : vector<1xf32> to vector<1x1xf32>
    %238 = vector.broadcast %237 : vector<1x1xf32> to vector<1x256xf32>
    %239 = arith.subf %235, %238 : vector<1x256xf32>
    %240 = math.exp %239 : vector<1x256xf32>
    %cst_60 = arith.constant dense<0.000000e+00> : vector<1xf32>
    %241 = vector.multi_reduction <add>, %240, %cst_60 [1] : vector<1x256xf32> to vector<1xf32>
    %242 = vector.shape_cast %241 : vector<1xf32> to vector<1x1xf32>
    %243 = vector.broadcast %242 : vector<1x1xf32> to vector<1x256xf32>
    %244 = arith.divf %240, %243 : vector<1x256xf32>
    %245 = vector.broadcast %244 : vector<1x256xf32> to vector<4x256xf32>
    %246 = arith.mulf %245, %133 : vector<4x256xf32>
    %c1_61 = arith.constant 1 : index
    %c0_62 = arith.constant 0 : index
    %c0_63 = arith.constant 0 : index
    %247 = vector.load %arg6[%c1_61, %c0_62, %c0_63] : memref<2x4x256xf32, #tpu.memory_space<vmem>>, vector<1x4x256xf32>
    %248 = vector.shape_cast %247 : vector<1x4x256xf32> to vector<4x256xf32>
    %249 = vector.shape_cast %246 : vector<4x256xf32> to vector<1x4x256xf32>
    tpu.vector_store %arg6[%c1_61, %c0_62, %c0_63], %249 {strides = array<i32>} : memref<2x4x256xf32, #tpu.memory_space<vmem>>, vector<1x4x256xf32>,
    %c1_64 = arith.constant 1 : index
    %c0_65 = arith.constant 0 : index
    %c0_66 = arith.constant 0 : index
    %250 = vector.load %arg8[%c1_64, %c0_65, %c0_66] : memref<2x1x256xf32, #tpu.memory_space<vmem>>, vector<1x1x256xf32>
    %251 = vector.shape_cast %250 : vector<1x1x256xf32> to vector<1x256xf32>
    %252 = vector.shape_cast %244 : vector<1x256xf32> to vector<1x1x256xf32>
    tpu.vector_store %arg8[%c1_64, %c0_65, %c0_66], %252 {strides = array<i32>} : memref<2x1x256xf32, #tpu.memory_space<vmem>>, vector<1x1x256xf32>,
    %253 = vector.broadcast %183 : vector<32x1xf32> to vector<32x4xf32>
    %254 = arith.mulf %253, %1 : vector<32x4xf32>
    %cst_67 = arith.constant dense<0.000000e+00> : vector<4xf32>
    %255 = vector.multi_reduction <add>, %254, %cst_67 [0] : vector<32x4xf32> to vector<4xf32>
    %256 = vector.shape_cast %255 : vector<4xf32> to vector<1x4xf32>
    %c1_68 = arith.constant 1 : index
    %c0_69 = arith.constant 0 : index
    %c0_70 = arith.constant 0 : index
    %257 = vector.load %arg7[%c1_68, %c0_69, %c0_70] : memref<2x1x4xf32, #tpu.memory_space<vmem>>, vector<1x1x4xf32>
    %258 = vector.shape_cast %257 : vector<1x1x4xf32> to vector<1x4xf32>
    %259 = vector.shape_cast %256 : vector<1x4xf32> to vector<1x1x4xf32>
    tpu.vector_store %arg7[%c1_68, %c0_69, %c0_70], %259 {strides = array<i32>} : memref<2x1x4xf32, #tpu.memory_space<vmem>>, vector<1x1x4xf32>,
    return
  }
  func.func @transform_0(%arg0: i32) -> (i32, i32, i32) {
    %c0_i32 = arith.constant 0 : i32
    %c0_i32_0 = arith.constant 0 : i32
    %c0_i32_1 = arith.constant 0 : i32
    return %arg0, %c0_i32, %c0_i32_0 : i32, i32, i32
  }
  func.func @transform_1(%arg0: i32) -> (i32, i32) {
    %c0_i32 = arith.constant 0 : i32
    %c0_i32_0 = arith.constant 0 : i32
    %c0_i32_1 = arith.constant 0 : i32
    return %c0_i32, %c0_i32_0 : i32, i32
  }
  func.func @transform_2(%arg0: i32) -> (i32, i32) {
    %c0_i32 = arith.constant 0 : i32
    %c0_i32_0 = arith.constant 0 : i32
    %c0_i32_1 = arith.constant 0 : i32
    return %c0_i32, %c0_i32_0 : i32, i32
  }
  func.func @transform_3(%arg0: i32) -> (i32, i32) {
    %c0_i32 = arith.constant 0 : i32
    %c0_i32_0 = arith.constant 0 : i32
    %c0_i32_1 = arith.constant 0 : i32
    return %c0_i32, %c0_i32_0 : i32, i32
  }
  func.func @transform_4(%arg0: i32) -> (i32, i32) {
    %c0_i32 = arith.constant 0 : i32
    %c0_i32_0 = arith.constant 0 : i32
    %c0_i32_1 = arith.constant 0 : i32
    return %c0_i32, %c0_i32_0 : i32, i32
  }
  func.func @transform_5(%arg0: i32) -> (i32, i32, i32) {
    %c0_i32 = arith.constant 0 : i32
    %c0_i32_0 = arith.constant 0 : i32
    %c0_i32_1 = arith.constant 0 : i32
    return %arg0, %c0_i32, %c0_i32_0 : i32, i32, i32
  }
  func.func @transform_6(%arg0: i32) -> (i32, i32, i32) {
    %c0_i32 = arith.constant 0 : i32
    %c0_i32_0 = arith.constant 0 : i32
    %c0_i32_1 = arith.constant 0 : i32
    return %arg0, %c0_i32, %c0_i32_0 : i32, i32, i32
  }
  func.func @transform_7(%arg0: i32) -> (i32, i32, i32) {
    %c0_i32 = arith.constant 0 : i32
    %c0_i32_0 = arith.constant 0 : i32
    %c0_i32_1 = arith.constant 0 : i32
    return %arg0, %c0_i32, %c0_i32_0 : i32, i32, i32
  }
}

</mosaic_0001>

<bundles_post_ra>
// kernel: tpu_custom_call.1
= control target key start
LH: loop header
LB: loop body
LE: loop exit
PB: predicated region body
PF: predicated region fallthrough
CT: control target
= control target key end

     0   :  { %13 = vsyncpa [#allocation3], 0  ;;  %vm45_vm0 = vcmask 1043456   ;;  %s2142_s0 = inlined_call_operand.vmem [shape: f32[2,4,256], index: 0, kind: input, shape index: {}]   ;;  %s2143_s1 = inlined_call_operand.vmem [shape: f32[32,4], index: 1, kind: input, shape index: {}]   ;;  %s2144_s2 = inlined_call_operand.vmem [shape: f32[32,4], index: 2, kind: input, shape index: {}]   ;;  %s2145_s3 = inlined_call_operand.vmem [shape: f32[32,1], index: 3, kind: input, shape index: {}]   ;;  %s2146_s4 = inlined_call_operand.vmem [shape: f32[32,1], index: 4, kind: input, shape index: {}]   ;;  %s2147_s5 = inlined_call_operand.hbm [shape: f32[2,4,256], index: 5, kind: output, shape index: {0}]   ;;  %s2148_s6 = inlined_call_operand.hbm [shape: f32[2,1,4], index: 6, kind: output, shape index: {1}]   ;;  %s2149_s7 = inlined_call_operand.hbm [shape: f32[2,1,256], index: 7, kind: output, shape index: {2}]  }
   0x1   :  { %v1422_v0 = vld [vmem:[%s2142_s0] sm:$0xff]  ;;  %v1427_v1 = vld [vmem:[%s2142_s0 + $0x8] sm:$0xff] }
   0x2   :  { %14 = vsyncpa [#allocation5], 0  ;;  %v1431_v2 = vcombine.high %v1422_v0, %v1422_v0  ;;  %v46_v3 = vsel %vm45_vm0, %v1422_v0, 0.0  ;;  %v1436_v4 = vcombine.high %v1427_v1, %v1427_v1  ;;  %v674_v6 = vsel %vm45_vm0, %v1427_v1, 0.0  ;;  %v1454_v16 = vld [vmem:[%s2143_s1] sm:$0xff]  ;;  %v1467_v22 = vld [vmem:[%s2143_s1 + $0x8] sm:$0xff] }
   0x3   :  { %v1362_v10 = vmov 0   ;;  %v2150_v11 = vlaneseq  ;;  %s1363_s9 = smov 127   ;;  %v1488_v31 = vld [vmem:[%s2143_s1 + $0x10] sm:$0xff]  ;;  %s1364_s12 = smov 126   ;;  %v1517_v44 = vld [vmem:[%s2143_s1 + $0x18] sm:$0xff]  ;;  %v1366_v52 = vmov 2  }
   0x4   :  { %2160 = vst [vmem:[#allocation9_spill] sm:$0xff] %v1431_v2  ;;  %2161 = vst [vmem:[#allocation10_spill] sm:$0xff] %v1436_v4  ;;  %v47_v5 = vsel %vm45_vm0, %v1431_v2, 0.0  ;;  %v675_v7 = vsel %vm45_vm0, %v1436_v4, 0.0  ;;  %1250 = vset.pattern.permute.xlu1 %v1362_v10  ;;  %1251 = vset.pattern.permute.xlu0 %v1362_v10  ;;  %s1365_s13 = smov 125   ;;  %v1367_v54 = vmov 1  }
   0x5   :  { %v48_v8 = vadd.f32 %v47_v5, %v46_v3  ;;  %v676_v9 = vadd.f32 %v675_v7, %v674_v6  ;;  %v1444_v12 = vshrl.u32 %v2150_v11, 7  ;;  %v1368_v56 = vmov 3   ;;  %v1550_v57 = vld [vmem:[%s2145_s3 + $0x8] sm:$0xff]  ;;  %v1565_v59 = vld [vmem:[%s2146_s4 + $0x10] sm:$0xff]  ;;  %v1578_v60 = vld [vmem:[%s2145_s3] sm:$0xff]  ;;  %s1370_s1 = smov [#allocation2]  }
   0x6   :  { %v1558_v58 = vld [vmem:[%s2146_s4 + $0x8] sm:$0xff]  ;;  %v1585_v61 = vld [vmem:[%s2145_s3 + $0x10] sm:$0xff]  ;;  %v1591_v62 = vld [vmem:[%s2146_s4] sm:$0xff]  ;;  %vm482_vm1 = vcmask 7168   ;;  %s1190_s16 = sshll.u32 %s1370_s1, 4  ;;  %vm653_vm3 = vcmask 31744   ;;  %s1191_s16 = int_to_ptr.vmem [resolvable:$true] %s1190_s16 }
   0x7   :  { %49 = vadd.xlane.f32.xlu0 %v48_v8  ;;  %2162 = vst [vmem:[#allocation11_spill] sm:$0xff] %v1444_v12  ;;  %v1447_v13 = vsub.s32 1, %v1444_v12  ;;  %v1459_v19 = vsub.s32 2, %v1444_v12  ;;  %v1481_v29 = vsub.s32 3, %v1444_v12  ;;  %v1597_v3 = vld [vmem:[%s2145_s3 + $0x18] sm:$0xff]  ;;  %s1292_s18 = scalar_lea.vmem %s1191_s16, 256  ;;  %p1297_p1 = scmp.lt.s32.totalorder %s1191_s16, %s1191_s16 }
   0x8   :  { %v1603_v7 = vld [vmem:[%s2146_s4 + $0x18] sm:$0xff]  ;;  %p1293_p0 = scmp.ne.s32.totalorder %s1191_s16, %s1292_s18  ;;  %p1298_p2 = scmp.lt.s32.totalorder %s1292_s18, %s1292_s18 }
   0xa   :  { %p1299_p3 = por %p1298_p2, %p1297_p1 }
   0xb   :  { %677 = vadd.xlane.f32.xlu0 %v676_v9 }
   0xc   :  { %p1300_p4 = pnand %p1299_p3, %p1293_p0 }
  0x94   :  { %v50_v14 = vpop.xlane.xlu0 %49 }
  0x95   :  { %v1449_v15 = vmul.f32 0.00390625, %v50_v14 }
  0x97   :  { %v159_v17 = vrot.slane %v1449_v15, %v1447_v13  ;;  %v237_v30 = vrot.slane %v1449_v15, %v1459_v19  ;;  %v315_v32 = vrot.slane %v1449_v15, %v1481_v29 }
  0x98   :  { %v678_v18 = vpop.xlane.xlu0 %677 }
  0x99   :  { %v1461_v20 = vmul.f32 0.00390625, %v678_v18  ;;  %v160_v21 = vmul.f32 %v159_v17, %v1454_v16  ;;  %v161_v26 = vmul.f32 %v159_v17, %v1467_v22  ;;  %v240_v33 = vmul.f32 %v237_v30, %v1488_v31 }
  0x9a   :  { %v162_v34 = vmul.f32 %v159_v17, %v1488_v31  ;;  %v317_v35 = vmul.f32 %v315_v32, %v1467_v22  ;;  %v238_v36 = vmul.f32 %v237_v30, %v1454_v16  ;;  %v239_v39 = vmul.f32 %v237_v30, %v1467_v22 }
  0x9b   :  { %v751_v23 = vrot.slane %v1461_v20, %v1447_v13  ;;  %v813_v24 = vrot.slane %v1461_v20, %v1459_v19  ;;  %168 = vrot.lane.b32.xlu1 %v160_v21, %s1363_s9  ;;  %v875_v37 = vrot.slane %v1461_v20, %v1481_v29  ;;  %v318_v42 = vmul.f32 %v315_v32, %v1488_v31 }
  0x9c   :  { %v163_v46 = vmul.f32 %v159_v17, %v1517_v44  ;;  %v316_v48 = vmul.f32 %v315_v32, %v1454_v16  ;;  %v241_v51 = vmul.f32 %v237_v30, %v1517_v44  ;;  %v319_v55 = vmul.f32 %v315_v32, %v1517_v44 }
  0x9d   :  { %v752_v25 = vmul.f32 %v751_v23, %v1454_v16  ;;  %v815_v27 = vmul.f32 %v813_v24, %v1467_v22  ;;  %v753_v28 = vmul.f32 %v751_v23, %v1467_v22  ;;  %v816_v38 = vmul.f32 %v813_v24, %v1488_v31 }
  0x9e   :  { %v877_v40 = vmul.f32 %v875_v37, %v1467_v22  ;;  %v754_v41 = vmul.f32 %v751_v23, %v1488_v31  ;;  %v814_v43 = vmul.f32 %v813_v24, %v1454_v16  ;;  %v878_v45 = vmul.f32 %v875_v37, %v1488_v31 }
  0x9f   :  { %760 = vrot.lane.b32.xlu0 %v752_v25, %s1363_s9  ;;  %170 = vrot.lane.b32.xlu1 %v161_v26, %s1363_s9  ;;  %v879_v47 = vmul.f32 %v875_v37, %v1517_v44  ;;  %v755_v49 = vmul.f32 %v751_v23, %v1517_v44  ;;  %v876_v50 = vmul.f32 %v875_v37, %v1454_v16  ;;  %v1607_v25 = vsub.s32 0, %v1444_v12 }
  0xa0   :  { %v817_v53 = vmul.f32 %v813_v24, %v1517_v44 }
  0xa3   :  { %824 = vrot.lane.b32.xlu0 %v815_v27, %s1364_s12  ;;  %762 = vrot.lane.b32.xlu1 %v753_v28, %s1363_s9  ;;  %v709_v27 = vrot.slane %v1461_v20, %v1607_v25  ;;  %v101_v28 = vrot.slane %v1449_v15, %v1607_v25 }
  0xa5   :  { %v102_v37 = vmul.f32 %v101_v28, %v1454_v16  ;;  %v712_v20 = vmul.f32 %v709_v27, %v1488_v31 }
  0xa7   :  { %250 = vrot.lane.b32.xlu0 %v240_v33, %s1364_s12  ;;  %172 = vrot.lane.b32.xlu1 %v162_v34, %s1363_s9  ;;  %v711_v33 = vmul.f32 %v709_v27, %v1467_v22  ;;  %v103_v34 = vmul.f32 %v101_v28, %v1467_v22 }
  0xab   :  { %326 = vrot.lane.b32.xlu0 %v317_v35, %s1365_s13  ;;  %246 = vrot.lane.b32.xlu1 %v238_v36, %s1364_s12 }
  0xaf   :  { %826 = vrot.lane.b32.xlu0 %v816_v38, %s1364_s12  ;;  %248 = vrot.lane.b32.xlu1 %v239_v39, %s1364_s12 }
  0xb3   :  { %886 = vrot.lane.b32.xlu0 %v877_v40, %s1365_s13  ;;  %764 = vrot.lane.b32.xlu1 %v754_v41, %s1363_s9  ;;  %v710_v41 = vmul.f32 %v709_v27, %v1454_v16 }
  0xb7   :  { %328 = vrot.lane.b32.xlu0 %v318_v42, %s1365_s13  ;;  %822 = vrot.lane.b32.xlu1 %v814_v43, %s1364_s12  ;;  %v104_v42 = vmul.f32 %v101_v28, %v1488_v31 }
  0xbb   :  { %888 = vrot.lane.b32.xlu0 %v878_v45, %s1365_s13  ;;  %174 = vrot.lane.b32.xlu1 %v163_v46, %s1363_s9 }
  0xbf   :  { %890 = vrot.lane.b32.xlu0 %v879_v47, %s1365_s13  ;;  %324 = vrot.lane.b32.xlu1 %v316_v48, %s1365_s13 }
  0xc3   :  { %766 = vrot.lane.b32.xlu1 %v755_v49, %s1363_s9  ;;  %59 = vperm.xlu0 %1251, %v1467_v22  }
  0xc7   :  { %884 = vrot.lane.b32.xlu1 %v876_v50, %s1365_s13  ;;  %64 = vperm.xlu0 %1251, %v1488_v31  }
  0xcb   :  { %252 = vrot.lane.b32.xlu1 %v241_v51, %s1364_s12  ;;  %1253 = vset.pattern.permute.xlu0 %v1366_v52 }
  0xcc   :  { %185 = vperm.xlu0 %1253, %v1454_v16  }
  0xcf   :  { %828 = vrot.lane.b32.xlu1 %v817_v53, %s1364_s12 }
  0xd0   :  { %1256 = vset.pattern.permute.xlu0 %v1367_v54 }
  0xd1   :  { %119 = vperm.xlu0 %1256, %v1517_v44  }
  0xd3   :  { %330 = vrot.lane.b32.xlu1 %v319_v55, %s1365_s13 }
  0xd5   :  { %1259 = vset.pattern.permute.xlu0 %v1368_v56 }
  0xd6   :  { %267 = vperm.xlu0 %1259, %v1467_v22  }
  0xd7   :  { %54 = vperm.xlu1 %1250, %v1454_v16  }
  0xda   :  { %275 = vperm.xlu0 %1259, %v1517_v44  }
  0xdb   :  { %1252 = vset.pattern.permute.xlu1 %v1367_v54 }
  0xdc   :  { %107 = vperm.xlu1 %1252, %v1454_v16  }
  0xde   :  { %1263 = vset.pattern.permute.xlu0 %v1362_v10 }
  0xdf   :  { %433 = vperm.xlu0 %1263, %v1550_v57  }
  0xe0   :  { %111 = vperm.xlu1 %1252, %v1467_v22  }
  0xe3   :  { %461 = vperm.xlu0 %1263, %v1558_v58  }
  0xe4   :  { %115 = vperm.xlu1 %1252, %v1488_v31  }
  0xe7   :  { %466 = vperm.xlu0 %1263, %v1565_v59  }
  0xe8   :  { %1254 = vset.pattern.permute.xlu1 %v1366_v52 }
  0xe9   :  { %189 = vperm.xlu1 %1254, %v1467_v22  }
  0xed   :  { %1255 = vset.pattern.permute.xlu1 %v1362_v10 }
  0xee   :  { %69 = vperm.xlu1 %1255, %v1517_v44  }
  0xf2   :  { %1257 = vset.pattern.permute.xlu1 %v1366_v52 }
  0xf3   :  { %193 = vperm.xlu1 %1257, %v1488_v31  }
  0xf7   :  { %1258 = vset.pattern.permute.xlu1 %v1368_v56 }
  0xf8   :  { %263 = vperm.xlu1 %1258, %v1454_v16  }
  0xfc   :  { %1260 = vset.pattern.permute.xlu1 %v1366_v52 }
  0xfd   :  { %197 = vperm.xlu1 %1260, %v1517_v44  }
 0x101   :  { %1261 = vset.pattern.permute.xlu1 %v1368_v56 }
 0x102   :  { %271 = vperm.xlu1 %1261, %v1488_v31  }
 0x106   :  { %1262 = vset.pattern.permute.xlu1 %v1362_v10 }
 0x107   :  { %428 = vperm.xlu1 %1262, %v1578_v60  }
 0x10b   :  { %438 = vperm.xlu1 %1262, %v1585_v61  }
 0x10d   :  { %v169_v63 = vpop.permute.xlu1 %168 }
 0x10e   :  { %v180_v40 = vadd.f32 %v169_v63, %v102_v37 }
 0x10f   :  { %456 = vperm.xlu1 %1262, %v1591_v62  }
 0x111   :  { %v761_v5 = vpop.permute.xlu0 %760  ;;  %v171_v6 = vpop.permute.xlu1 %170 }
 0x112   :  { %v181_v38 = vadd.f32 %v171_v6, %v103_v34  ;;  %v772_v46 = vadd.f32 %v761_v5, %v710_v41 }
 0x113   :  { %443 = vperm.xlu1 %1262, %v1597_v3  }
 0x115   :  { %v825_v8 = vpop.permute.xlu0 %824  ;;  %v763_v9 = vpop.permute.xlu1 %762 }
 0x116   :  { %v773_v35 = vadd.f32 %v763_v9, %v711_v33 }
 0x117   :  { %471 = vperm.xlu1 %1262, %v1603_v7  }
 0x118   :  { %v835_v43 = vadd.f32 %v825_v8, %v773_v35 }
 0x119   :  { %v173_v10 = vpop.permute.xlu1 %172  ;;  %v251_v14 = vpop.permute.xlu0 %250 }
 0x11a   :  { %v182_v22 = vadd.f32 %v173_v10, %v104_v42 }
 0x11c   :  { %v260_v63 = vadd.f32 %v251_v14, %v182_v22  ;;  %v105_v14 = vmul.f32 %v101_v28, %v1517_v44 }
 0x11d   :  { %v247_v17 = vpop.permute.xlu1 %246  ;;  %v327_v18 = vpop.permute.xlu0 %326 }
 0x11e   :  { %v258_v47 = vadd.f32 %v247_v17, %v180_v40  ;;  %v713_v17 = vmul.f32 %v709_v27, %v1517_v44 }
 0x121   :  { %v249_v21 = vpop.permute.xlu1 %248  ;;  %v827_v24 = vpop.permute.xlu0 %826 }
 0x122   :  { %v259_v15 = vadd.f32 %v249_v21, %v181_v38 }
 0x124   :  { %v337_v52 = vadd.f32 %v327_v18, %v259_v15 }
 0x125   :  { %v765_v23 = vpop.permute.xlu1 %764  ;;  %v887_v30 = vpop.permute.xlu0 %886 }
 0x126   :  { %v774_v48 = vadd.f32 %v765_v23, %v712_v20  ;;  %v897_v49 = vadd.f32 %v887_v30, %v835_v43  ;;  %v1625_v5 = vmax.f32 %v337_v52, 0.0 }
 0x128   :  { %v836_v55 = vadd.f32 %v827_v24, %v774_v48  ;;  %v1619_v16 = vmax.f32 %v897_v49, 0.0  ;;  %v497_v27 = vmul.f32 %v1625_v5, %v1625_v5  ;;  %v484_v40 = vsel %vm482_vm1, %v1625_v5, 0.0 }
 0x129   :  { %v823_v26 = vpop.permute.xlu1 %822  ;;  %v329_v39 = vpop.permute.xlu0 %328 }
 0x12a   :  { %v834_v50 = vadd.f32 %v823_v26, %v772_v46  ;;  %2163 = vst [vmem:[#allocation12_spill] sm:$0xff] %v1619_v16  ;;  %v338_v9 = vadd.f32 %v329_v39, %v260_v63  ;;  %v1016_v21 = vmul.f32 %v1619_v16, %v1619_v16  ;;  %v1003_v33 = vsel %vm482_vm1, %v1619_v16, 0.0 }
 0x12b   :  { %v501_v43 = vsel %vm482_vm1, %v497_v27, 0.0 }
 0x12c   :  { %v1643_v34 = vmax.f32 %v338_v9, 0.0  ;;  %v1020_v38 = vsel %vm482_vm1, %v1016_v21, 0.0 }
 0x12d   :  { %v175_v32 = vpop.permute.xlu1 %174  ;;  %v889_v53 = vpop.permute.xlu0 %888 }
 0x12e   :  { %v898_v6 = vadd.f32 %v889_v53, %v836_v55  ;;  %2166 = vst [vmem:[#allocation15_spill] sm:$0xff] %v1643_v34  ;;  %v498_v48 = vmul.f32 %v1643_v34, %v1643_v34 }
 0x130   :  { %v1633_v23 = vmax.f32 %v898_v6, 0.0 }
 0x131   :  { %v325_v36 = vpop.permute.xlu1 %324  ;;  %v891_v39 = vpop.permute.xlu0 %890 }
 0x132   :  { %v336_v51 = vadd.f32 %v325_v36, %v258_v47  ;;  %2165 = vst [vmem:[#allocation14_spill] sm:$0xff] %v1633_v23  ;;  %v183_v36 = vadd.f32 %v175_v32, %v105_v14  ;;  %v1017_v20 = vmul.f32 %v1633_v23, %v1633_v23  ;;  %v1005_v22 = vsel %vm482_vm1, %v1633_v23, 0.0 }
 0x134   :  { %v1621_v31 = vmax.f32 %v336_v51, 0.0  ;;  %v486_v51 = vsel %vm482_vm1, %v1643_v34, 0.0 }
 0x135   :  { %v767_v45 = vpop.permute.xlu1 %766 }
 0x136   :  { %v496_v24 = vmul.f32 %v1621_v31, %v1621_v31  ;;  %v775_v26 = vadd.f32 %v767_v45, %v713_v17  ;;  %v483_v44 = vsel %vm482_vm1, %v1621_v31, 0.0  ;;  %v503_v17 = vsel %vm482_vm1, %v498_v48, 0.0 }
 0x137   :  { %v485_v45 = vadd.f32 %v484_v40, %v483_v44 }
 0x138   :  { %v500_v42 = vsel %vm482_vm1, %v496_v24, 0.0 }
 0x139   :  { %v885_v54 = vpop.permute.xlu1 %884  ;;  %v502_v52 = vadd.f32 %v501_v43, %v500_v42 }
 0x13a   :  { %v896_v56 = vadd.f32 %v885_v54, %v834_v50  ;;  %v1022_v54 = vsel %vm482_vm1, %v1017_v20, 0.0 }
 0x13b   :  { %v504_v27 = vadd.f32 %v503_v17, %v502_v52 }
 0x13c   :  { %v1623_v8 = vmax.f32 %v896_v56, 0.0 }
 0x13d   :  { %v253_v10 = vpop.permute.xlu1 %252 }
 0x13e   :  { %2164 = vst [vmem:[#allocation13_spill] sm:$0xff] %v1623_v8  ;;  %v1015_v18 = vmul.f32 %v1623_v8, %v1623_v8  ;;  %v1002_v30 = vsel %vm482_vm1, %v1623_v8, 0.0  ;;  %v261_v15 = vadd.f32 %v253_v10, %v183_v36  ;;  %v487_v10 = vadd.f32 %v486_v51, %v485_v45 }
 0x13f   :  { %v1004_v41 = vadd.f32 %v1003_v33, %v1002_v30 }
 0x140   :  { %v1019_v28 = vsel %vm482_vm1, %v1015_v18, 0.0 }
 0x141   :  { %v829_v35 = vpop.permute.xlu1 %828  ;;  %v1021_v46 = vadd.f32 %v1020_v38, %v1019_v28  ;;  %v1006_v53 = vadd.f32 %v1005_v22, %v1004_v41 }
 0x142   :  { %v837_v37 = vadd.f32 %v829_v35, %v775_v26 }
 0x143   :  { %v1023_v6 = vadd.f32 %v1022_v54, %v1021_v46 }
 0x144   :  { %v899_v32 = vadd.f32 %v891_v39, %v837_v37 }
 0x145   :  { %v331_v47 = vpop.permute.xlu1 %330 }
 0x146   :  { %v1659_v49 = vmax.f32 %v899_v32, 0.0  ;;  %v339_v50 = vadd.f32 %v331_v47, %v261_v15 }
 0x148   :  { %2167 = vst [vmem:[#allocation16_spill] sm:$0xff] %v1659_v49  ;;  %v1007_v55 = vsel %vm482_vm1, %v1659_v49, 0.0  ;;  %v1018_v56 = vmul.f32 %v1659_v49, %v1659_v49  ;;  %v1668_v63 = vmax.f32 %v339_v50, 0.0 }
 0x149   :  { %v1008_v9 = vadd.f32 %v1007_v55, %v1006_v53 }
 0x14a   :  { %2168 = vst [vmem:[#allocation17_spill] sm:$0xff] %v1668_v63  ;;  %v1024_v18 = vsel %vm482_vm1, %v1018_v56, 0.0  ;;  %v488_v21 = vsel %vm482_vm1, %v1668_v63, 0.0  ;;  %v499_v14 = vmul.f32 %v1668_v63, %v1668_v63 }
 0x14b   :  { %v1009_v24 = vrot.slane %v1008_v9, 4  ;;  %v1025_v26 = vadd.f32 %v1024_v18, %v1023_v6  ;;  %v489_v30 = vadd.f32 %v488_v21, %v487_v10 }
 0x14c   :  { %v505_v33 = vsel %vm482_vm1, %v499_v14, 0.0 }
 0x14d   :  { %v1010_v35 = vadd.f32 %v1009_v24, %v1008_v9  ;;  %v1026_v36 = vrot.slane %v1025_v26, 4  ;;  %v490_v44 = vrot.slane %v489_v30, 4  ;;  %v506_v28 = vadd.f32 %v505_v33, %v504_v27 }
 0x14f   :  { %v1011_v37 = vrot.slane %v1010_v35, 2  ;;  %v1027_v38 = vadd.f32 %v1026_v36, %v1025_v26  ;;  %v491_v39 = vadd.f32 %v490_v44, %v489_v30  ;;  %v507_v40 = vrot.slane %v506_v28, 4 }
 0x151   :  { %v1012_v41 = vadd.f32 %v1011_v37, %v1010_v35  ;;  %v1028_v20 = vrot.slane %v1027_v38, 2  ;;  %v492_v42 = vrot.slane %v491_v39, 2  ;;  %v508_v15 = vadd.f32 %v507_v40, %v506_v28 }
 0x153   :  { %v1013_v32 = vrot.slane %v1012_v41, 1  ;;  %v1029_v43 = vadd.f32 %v1028_v20, %v1027_v38  ;;  %v493_v45 = vadd.f32 %v492_v42, %v491_v39  ;;  %v509_v46 = vrot.slane %v508_v15, 2 }
 0x155   :  { %v1014_v47 = vadd.f32 %v1013_v32, %v1012_v41  ;;  %v1030_v48 = vrot.slane %v1029_v43, 1  ;;  %v494_v22 = vrot.slane %v493_v45, 1  ;;  %v510_v50 = vadd.f32 %v509_v46, %v508_v15 }
 0x156   :  { %v1677_v27 = vpop.permute.xlu1 %54 }
 0x157   :  { %v1031_v51 = vadd.f32 %v1030_v48, %v1029_v43  ;;  %v1032_v52 = vmul.f32 0.03125, %v1014_v47  ;;  %v495_v53 = vadd.f32 %v494_v22, %v493_v45  ;;  %v511_v54 = vrot.slane %v510_v50, 1 }
 0x159   :  { %v1033_v55 = vmul.f32 0.03125, %v1031_v51  ;;  %v1034_v56 = vmul.f32 %v1032_v52, %v1032_v52  ;;  %v512_v6 = vadd.f32 %v511_v54, %v510_v50  ;;  %v513_v9 = vmul.f32 0.03125, %v495_v53  ;;  %v1695_v53 = vpop.permute.xlu0 %59 }
 0x15a   :  { %v1038_v35 = vsub.f32 %v1619_v16, %v1032_v52  ;;  %v1037_v38 = vsub.f32 %v1623_v8, %v1032_v52  ;;  %v1039_v42 = vsub.f32 %v1633_v23, %v1032_v52 }
 0x15b   :  { %v1035_v10 = vsub.f32 %v1033_v55, %v1034_v56  ;;  %v514_v17 = vmul.f32 0.03125, %v512_v6  ;;  %v515_v18 = vmul.f32 %v513_v9, %v513_v9  ;;  %v1680_v44 = vpop.permute.xlu1 %107  ;;  %v519_v28 = vsub.f32 %v1625_v5, %v513_v9 }
 0x15c   :  { %v518_v37 = vsub.f32 %v1621_v31, %v513_v9  ;;  %v520_v43 = vsub.f32 %v1643_v34, %v513_v9  ;;  %v521_v54 = vsub.f32 %v1668_v63, %v513_v9 }
 0x15d   :  { %v1036_v21 = vmax.f32 %v1035_v10, 0.0  ;;  %v516_v14 = vsub.f32 %v514_v17, %v515_v18 }
 0x15f   :  { %v1041_v24 = vadd.f32 1e-05, %v1036_v21  ;;  %v517_v26 = vmax.f32 %v516_v14, 0.0  ;;  %v1690_v47 = vpop.permute.xlu1 %111  ;;  %v65_v21 = vpop.permute.xlu0 %64 }
 0x161   :  { %1266 = vrsqrt.f32 %v1041_v24  ;;  %v522_v30 = vadd.f32 1e-05, %v517_v26 }
 0x163   :  { %1268 = vrsqrt.f32 %v522_v30  ;;  %v206_v30 = vsub.s32 6, %v1444_v12 }
 0x16b   :  { %v1267_v33 = vpop.eup %1266 }
 0x16c   :  { %v1044_v39 = vmul.f32 %v1267_v33, %v1038_v35  ;;  %v1043_v20 = vmul.f32 %v1267_v33, %v1037_v38  ;;  %v1045_v46 = vmul.f32 %v1267_v33, %v1039_v42  ;;  %v125_v38 = vrot.slane %v1422_v0, %v1447_v13 }
 0x16d   :  { %v1269_v36 = vpop.eup %1268  ;;  %v779_v42 = vrot.slane %v1427_v1, %v1459_v19 }
 0x16e   :  { %v525_v40 = vmul.f32 %v1269_v36, %v519_v28  ;;  %v524_v41 = vmul.f32 %v1269_v36, %v518_v37  ;;  %v1048_v45 = vmul.f32 %v1044_v39, %v1550_v57  ;;  %v1047_v50 = vmul.f32 %v1043_v20, %v1578_v60 }
 0x16f   :  { %v526_v51 = vmul.f32 %v1269_v36, %v520_v43  ;;  %v1049_v10 = vmul.f32 %v1045_v46, %v1585_v61  ;;  %v527_v17 = vmul.f32 %v1269_v36, %v521_v54  ;;  %v683_v28 = vrot.slane %v1427_v1, %v1607_v25 }
 0x170   :  { %v529_v15 = vmul.f32 %v525_v40, %v1550_v57  ;;  %v528_v32 = vmul.f32 %v524_v41, %v1578_v60  ;;  %v1052_v55 = vadd.f32 %v1048_v45, %v1558_v58  ;;  %v1040_v57 = vsub.f32 %v1659_v49, %v1032_v52  ;;  %v1703_v60 = vpop.permute.xlu1 %115 }
 0x171   :  { %v1051_v56 = vadd.f32 %v1047_v50, %v1591_v62  ;;  %v530_v6 = vmul.f32 %v526_v51, %v1585_v61  ;;  %v1053_v14 = vadd.f32 %v1049_v10, %v1565_v59  ;;  %v128_v61 = vsub.s32 5, %v1444_v12 }
 0x172   :  { %v533_v48 = vadd.f32 %v529_v15, %v1558_v58  ;;  %v532_v22 = vadd.f32 %v528_v32, %v1591_v62  ;;  %v1046_v18 = vmul.f32 %v1267_v33, %v1040_v57  ;;  %v531_v58 = vmul.f32 %v527_v17, %v1597_v3  ;;  %v186_v33 = vpop.permute.xlu0 %185 }
 0x173   :  { %v534_v9 = vadd.f32 %v530_v6, %v1565_v59  ;;  %v78_v62 = vsub.s32 4, %v1444_v12  ;;  %v284_v59 = vsub.s32 7, %v1444_v12  ;;  %v129_v39 = vrot.slane %v1422_v0, %v128_v61 }
 0x174   :  { %543 = vperm.xlu0 %1263, %v533_v48   ;;  %538 = vperm.xlu1 %1262, %v532_v22   ;;  %v1050_v52 = vmul.f32 %v1046_v18, %v1597_v3  ;;  %v1711_v24 = vpop.permute.xlu1 %189  ;;  %v535_v26 = vadd.f32 %v531_v58, %v1603_v7  ;;  %v75_v3 = vrot.slane %v1422_v0, %v1607_v25 }
 0x175   :  { %v79_v36 = vrot.slane %v1422_v0, %v78_v62  ;;  %v687_v37 = vrot.slane %v1427_v1, %v78_v62  ;;  %v203_v40 = vrot.slane %v1422_v0, %v1459_v19  ;;  %v721_v41 = vrot.slane %v1427_v1, %v128_v61 }
 0x176   :  { %v1054_v35 = vadd.f32 %v1050_v52, %v1603_v7  ;;  %v717_v7 = vrot.slane %v1427_v1, %v1447_v13  ;;  %v207_v20 = vrot.slane %v1422_v0, %v206_v30  ;;  %v783_v15 = vrot.slane %v1427_v1, %v206_v30 }
 0x177   :  { %v281_v43 = vrot.slane %v1422_v0, %v1481_v29  ;;  %v285_v45 = vrot.slane %v1422_v0, %v284_v59  ;;  %v841_v46 = vrot.slane %v1427_v1, %v1481_v29  ;;  %v845_v48 = vrot.slane %v1427_v1, %v284_v59 }
 0x178   :  { %1062 = vperm.xlu0 %1263, %v1052_v55   ;;  %1057 = vperm.xlu1 %1262, %v1051_v56   ;;  %v1735_v32 = vpop.permute.xlu1 %69  ;;  %v1744_v22 = vrot.slane %v75_v3, %v1607_v25  ;;  %v1747_v50 = vrot.slane %v79_v36, %v1607_v25  ;;  %v1750_v51 = vrot.slane %v683_v28, %v1607_v25  ;;  %v120_v55 = vpop.permute.xlu0 %119 }
 0x179   :  { %v1753_v54 = vrot.slane %v687_v37, %v1607_v25  ;;  %v135_v0 = vrot.slane %v125_v38, %v1447_v13  ;;  %v1757_v57 = vrot.slane %v129_v39, %v1447_v13  ;;  %v1760_v1 = vrot.slane %v717_v7, %v1447_v13 }
 0x17a   :  { %v1763_v56 = vrot.slane %v203_v40, %v1459_v19  ;;  %v1766_v6 = vrot.slane %v721_v41, %v1447_v13  ;;  %v1769_v10 = vrot.slane %v207_v20, %v1459_v19  ;;  %v1772_v25 = vrot.slane %v779_v42, %v1459_v19 }
 0x17b   :  { %v1775_v17 = vrot.slane %v783_v15, %v1459_v19  ;;  %v1778_v18 = vrot.slane %v281_v43, %v1481_v29  ;;  %v1787_v13 = vrot.slane %v845_v48, %v1481_v29  ;;  %v92_v58 = vmul.f32 %v1744_v22, %v1695_v53 }
 0x17c   :  { %548 = vperm.xlu0 %1263, %v534_v9   ;;  %1067 = vperm.xlu1 %1262, %v1053_v14   ;;  %v1781_v9 = vrot.slane %v285_v45, %v1481_v29  ;;  %v1784_v14 = vrot.slane %v841_v46, %v1481_v29  ;;  %v93_v52 = vmul.f32 %v1747_v50, %v1695_v53  ;;  %v268_v28 = vpop.permute.xlu0 %267 }
 0x17d   :  { %v700_v19 = vmul.f32 %v1750_v51, %v1695_v53  ;;  %v701_v62 = vmul.f32 %v1753_v54, %v1695_v53  ;;  %v1798_v61 = vmul.f32 %v1744_v22, %v65_v21  ;;  %v1804_v29 = vmul.f32 %v1750_v51, %v65_v21 }
 0x17e   :  { %v1807_v30 = vmul.f32 %v1753_v54, %v65_v21  ;;  %v218_v59 = vmul.f32 %v1763_v56, %v186_v33  ;;  %v219_v3 = vmul.f32 %v1769_v10, %v186_v33  ;;  %v794_v53 = vmul.f32 %v1772_v25, %v186_v33 }
 0x17f   :  { %v795_v36 = vmul.f32 %v1775_v17, %v186_v33  ;;  %v90_v37 = vmul.f32 %v1744_v22, %v1677_v27  ;;  %v91_v38 = vmul.f32 %v1747_v50, %v1677_v27  ;;  %v141_v39 = vmul.f32 %v1757_v57, %v1680_v44 }
 0x180   :  { %553 = vperm.xlu0 %1263, %v535_v26   ;;  %1072 = vperm.xlu1 %1262, %v1054_v35   ;;  %v1801_v26 = vmul.f32 %v1747_v50, %v65_v21  ;;  %v1809_v35 = vpop.permute.xlu1 %193  ;;  %v140_v21 = vmul.f32 %v135_v0, %v1680_v44  ;;  %v698_v7 = vmul.f32 %v1750_v51, %v1677_v27  ;;  %v276_v16 = vpop.permute.xlu0 %275 }
 0x181   :  { %v732_v40 = vmul.f32 %v1760_v1, %v1680_v44  ;;  %v142_v33 = vmul.f32 %v135_v0, %v1690_v47  ;;  %v146_v41 = vmul.f32 %v135_v0, %v120_v55  ;;  %v699_v20 = vmul.f32 %v1753_v54, %v1677_v27 }
 0x182   :  { %v733_v42 = vmul.f32 %v1766_v6, %v1680_v44  ;;  %v143_v15 = vmul.f32 %v1757_v57, %v1690_v47  ;;  %v147_v43 = vmul.f32 %v1757_v57, %v120_v55  ;;  %v734_v45 = vmul.f32 %v1760_v1, %v1690_v47 }
 0x183   :  { %v735_v46 = vmul.f32 %v1766_v6, %v1690_v47  ;;  %v738_v48 = vmul.f32 %v1760_v1, %v120_v55  ;;  %v739_v11 = vmul.f32 %v1766_v6, %v120_v55  ;;  %v148_v4 = vadd.f32 %v140_v21, %v90_v37 }
 0x184   :  { %v149_v27 = vadd.f32 %v141_v39, %v91_v38  ;;  %v264_v2 = vpop.permute.xlu1 %263  ;;  %v298_v44 = vmul.f32 %v1778_v18, %v268_v28  ;;  %v299_v12 = vmul.f32 %v1781_v9, %v268_v28  ;;  %v740_v49 = vadd.f32 %v732_v40, %v698_v7 }
 0x185   :  { %v220_v63 = vmul.f32 %v1763_v56, %v1711_v24  ;;  %v150_v23 = vadd.f32 %v142_v33, %v92_v58  ;;  %v858_v34 = vmul.f32 %v1784_v14, %v268_v28  ;;  %v741_v47 = vadd.f32 %v733_v42, %v699_v20 }
 0x186   :  { %v221_v8 = vmul.f32 %v1769_v10, %v1711_v24  ;;  %v151_v55 = vadd.f32 %v143_v15, %v93_v52  ;;  %v859_v37 = vmul.f32 %v1787_v13, %v268_v28  ;;  %v796_v38 = vmul.f32 %v1772_v25, %v1711_v24 }
 0x187   :  { %v797_v21 = vmul.f32 %v1775_v17, %v1711_v24  ;;  %v742_v39 = vadd.f32 %v734_v45, %v700_v19  ;;  %v743_v7 = vadd.f32 %v735_v46, %v701_v62  ;;  %v144_v58 = vmul.f32 %v135_v0, %v1703_v60 }
 0x188   :  { %v226_v40 = vadd.f32 %v218_v59, %v148_v4  ;;  %v227_v33 = vadd.f32 %v219_v3, %v149_v27  ;;  %v1854_v20 = vmul.f32 %v1778_v18, %v276_v16  ;;  %v145_v52 = vmul.f32 %v1757_v57, %v1703_v60  ;;  %v198_v62 = vpop.permute.xlu1 %197 }
 0x189   :  { %v736_v28 = vmul.f32 %v1760_v1, %v1703_v60  ;;  %v802_v42 = vadd.f32 %v794_v53, %v740_v49  ;;  %v228_v15 = vadd.f32 %v220_v63, %v150_v23  ;;  %v737_v24 = vmul.f32 %v1766_v6, %v1703_v60 }
 0x18a   :  { %v803_v19 = vadd.f32 %v795_v36, %v741_v47  ;;  %v229_v45 = vadd.f32 %v221_v8, %v151_v55  ;;  %v1863_v4 = vmul.f32 %v1781_v9, %v276_v16  ;;  %v96_v0 = vmul.f32 %v1744_v22, %v1735_v32 }
 0x18b   :  { %v804_v59 = vadd.f32 %v796_v38, %v742_v39  ;;  %v805_v3 = vadd.f32 %v797_v21, %v743_v7  ;;  %v1868_v57 = vmul.f32 %v1784_v14, %v276_v16  ;;  %v97_v23 = vmul.f32 %v1747_v50, %v1735_v32 }
 0x18c   :  { %v704_v49 = vmul.f32 %v1750_v51, %v1735_v32  ;;  %v152_v63 = vadd.f32 %v144_v58, %v1798_v61  ;;  %v1876_v8 = vmul.f32 %v1787_v13, %v276_v16  ;;  %v705_v60 = vmul.f32 %v1753_v54, %v1735_v32 }
 0x18d   :  { %v153_v22 = vadd.f32 %v145_v52, %v1801_v26  ;;  %v744_v1 = vadd.f32 %v736_v28, %v1804_v29  ;;  %v306_v6 = vadd.f32 %v298_v44, %v228_v15  ;;  %v745_v53 = vadd.f32 %v737_v24, %v1807_v30  ;;  %v272_v30 = vpop.permute.xlu1 %271 }
 0x18e   :  { %v222_v50 = vmul.f32 %v1763_v56, %v1809_v35  ;;  %v223_v51 = vmul.f32 %v1769_v10, %v1809_v35  ;;  %v307_v61 = vadd.f32 %v299_v12, %v229_v45  ;;  %v296_v16 = vmul.f32 %v1778_v18, %v264_v2 }
 0x18f   :  { %v154_v36 = vadd.f32 %v146_v41, %v96_v0  ;;  %v866_v46 = vadd.f32 %v858_v34, %v804_v59  ;;  %v867_v27 = vadd.f32 %v859_v37, %v805_v3  ;;  %v798_v32 = vmul.f32 %v1772_v25, %v1809_v35 }
 0x190   :  { %v297_v54 = vmul.f32 %v1781_v9, %v264_v2  ;;  %v155_v26 = vadd.f32 %v147_v43, %v97_v23  ;;  %v746_v29 = vadd.f32 %v738_v48, %v704_v49  ;;  %v799_v44 = vmul.f32 %v1775_v17, %v1809_v35 }
 0x191   :  { %v856_v47 = vmul.f32 %v1784_v14, %v264_v2  ;;  %v747_v55 = vadd.f32 %v739_v11, %v705_v60  ;;  %v1894_v12 = vmax.f32 %v306_v6, 0.0  ;;  %v230_v38 = vadd.f32 %v222_v50, %v152_v63 }
 0x192   :  { %v231_v41 = vadd.f32 %v223_v51, %v153_v22  ;;  %v857_v34 = vmul.f32 %v1787_v13, %v264_v2  ;;  %v1897_v37 = vmax.f32 %v307_v61, 0.0  ;;  %v304_v21 = vadd.f32 %v296_v16, %v226_v40 }
 0x193   :  { %v224_v39 = vmul.f32 %v1763_v56, %v198_v62  ;;  %v1900_v43 = vmax.f32 %v866_v46, 0.0  ;;  %v300_v48 = vmul.f32 %v1778_v18, %v272_v30  ;;  %v806_v7 = vadd.f32 %v798_v32, %v744_v1 }
 0x194   :  { %v305_v35 = vadd.f32 %v297_v54, %v227_v33  ;;  %v225_v58 = vmul.f32 %v1769_v10, %v198_v62  ;;  %v301_v11 = vmul.f32 %v1781_v9, %v272_v30  ;;  %v807_v52 = vadd.f32 %v799_v44, %v745_v53 }
 0x195   :  { %v864_v28 = vadd.f32 %v856_v47, %v802_v42  ;;  %v800_v15 = vmul.f32 %v1772_v25, %v198_v62  ;;  %v860_v2 = vmul.f32 %v1784_v14, %v272_v30  ;;  %v865_v24 = vadd.f32 %v857_v34, %v803_v19 }
 0x196   :  { %v801_v40 = vmul.f32 %v1775_v17, %v198_v62  ;;  %v1908_v56 = vmax.f32 %v867_v27, 0.0  ;;  %v861_v45 = vmul.f32 %v1787_v13, %v272_v30  ;;  %v1911_v18 = vmax.f32 %v304_v21, 0.0 }
 0x197   :  { %v232_v33 = vadd.f32 %v224_v39, %v154_v36  ;;  %v372_v10 = vmul.f32 %v1894_v12, %v1894_v12  ;;  %v308_v9 = vadd.f32 %v300_v48, %v230_v38  ;;  %v1915_v0 = vmax.f32 %v305_v35, 0.0 }
 0x198   :  { %v233_v42 = vadd.f32 %v225_v58, %v155_v26  ;;  %v373_v25 = vmul.f32 %v1897_v37, %v1897_v37  ;;  %v309_v14 = vadd.f32 %v301_v11, %v231_v41  ;;  %v1919_v19 = vmax.f32 %v864_v28, 0.0 }
 0x199   :  { %v808_v17 = vadd.f32 %v800_v15, %v746_v29  ;;  %v932_v13 = vmul.f32 %v1900_v43, %v1900_v43  ;;  %v868_v62 = vadd.f32 %v860_v2, %v806_v7  ;;  %v1923_v59 = vmax.f32 %v865_v24, 0.0 }
 0x19a   :  { %v809_v3 = vadd.f32 %v801_v40, %v747_v55  ;;  %v933_v23 = vmul.f32 %v1908_v56, %v1908_v56  ;;  %v869_v49 = vadd.f32 %v861_v45, %v807_v52  ;;  %v370_v63 = vmul.f32 %v1911_v18, %v1911_v18 }
 0x19b   :  { %v352_v60 = vadd.f32 %v1894_v12, %v1911_v18  ;;  %v1931_v22 = vmax.f32 %v308_v9, 0.0  ;;  %v310_v1 = vadd.f32 %v1854_v20, %v232_v33  ;;  %v371_v6 = vmul.f32 %v1915_v0, %v1915_v0 }
 0x19c   :  { %v361_v53 = vadd.f32 %v1897_v37, %v1915_v0  ;;  %v1938_v50 = vmax.f32 %v309_v14, 0.0  ;;  %v311_v51 = vadd.f32 %v1863_v4, %v233_v42  ;;  %v930_v61 = vmul.f32 %v1919_v19, %v1919_v19 }
 0x19d   :  { %v912_v16 = vadd.f32 %v1900_v43, %v1919_v19  ;;  %v1945_v36 = vmax.f32 %v868_v62, 0.0  ;;  %v870_v20 = vadd.f32 %v1868_v57, %v808_v17  ;;  %v931_v46 = vmul.f32 %v1923_v59, %v1923_v59 }
 0x19e   :  { %v921_v27 = vadd.f32 %v1908_v56, %v1923_v59  ;;  %v1952_v32 = vmax.f32 %v869_v49, 0.0  ;;  %v871_v4 = vadd.f32 %v1876_v8, %v809_v3  ;;  %v378_v54 = vadd.f32 %v372_v10, %v370_v63 }
 0x19f   :  { %v353_v26 = vadd.f32 %v352_v60, %v1931_v22  ;;  %v374_v29 = vmul.f32 %v1931_v22, %v1931_v22  ;;  %v1958_v30 = vmax.f32 %v310_v1, 0.0  ;;  %v387_v44 = vadd.f32 %v373_v25, %v371_v6 }
 0x1a0   :  { %v362_v57 = vadd.f32 %v361_v53, %v1938_v50  ;;  %v375_v47 = vmul.f32 %v1938_v50, %v1938_v50  ;;  %v1963_v55 = vmax.f32 %v311_v51, 0.0  ;;  %v938_v38 = vadd.f32 %v932_v13, %v930_v61 }
 0x1a1   :  { %v913_v41 = vadd.f32 %v912_v16, %v1945_v36  ;;  %v934_v8 = vmul.f32 %v1945_v36, %v1945_v36  ;;  %v1968_v34 = vmax.f32 %v870_v20, 0.0  ;;  %v947_v21 = vadd.f32 %v933_v23, %v931_v46 }
 0x1a2   :  { %v922_v39 = vadd.f32 %v921_v27, %v1952_v32  ;;  %v935_v48 = vmul.f32 %v1952_v32, %v1952_v32  ;;  %v1973_v7 = vmax.f32 %v871_v4, 0.0  ;;  %v379_v35 = vadd.f32 %v378_v54, %v374_v29 }
 0x1a3   :  { %v354_v58 = vadd.f32 %v353_v26, %v1958_v30  ;;  %v376_v11 = vmul.f32 %v1958_v30, %v1958_v30  ;;  %v388_v52 = vadd.f32 %v387_v44, %v375_v47  ;;  %v363_v28 = vadd.f32 %v362_v57, %v1963_v55 }
 0x1a4   :  { %v377_v15 = vmul.f32 %v1963_v55, %v1963_v55  ;;  %v939_v2 = vadd.f32 %v938_v38, %v934_v8  ;;  %v914_v24 = vadd.f32 %v913_v41, %v1968_v34  ;;  %v936_v40 = vmul.f32 %v1968_v34, %v1968_v34 }
 0x1a5   :  { %v948_v45 = vadd.f32 %v947_v21, %v935_v48  ;;  %v923_v33 = vadd.f32 %v922_v39, %v1973_v7  ;;  %v937_v10 = vmul.f32 %v1973_v7, %v1973_v7  ;;  %v355_v9 = vrot.slane %v354_v58, 4 }
 0x1a6   :  { %v380_v42 = vadd.f32 %v379_v35, %v376_v11  ;;  %v364_v25 = vrot.slane %v363_v28, 4  ;;  %v389_v14 = vadd.f32 %v388_v52, %v377_v15  ;;  %v915_v17 = vrot.slane %v914_v24, 4 }
 0x1a7   :  { %v940_v13 = vadd.f32 %v939_v2, %v936_v40  ;;  %v924_v62 = vrot.slane %v923_v33, 4  ;;  %v949_v3 = vadd.f32 %v948_v45, %v937_v10  ;;  %v356_v23 = vadd.f32 %v355_v9, %v354_v58 }
 0x1a8   :  { %v381_v49 = vrot.slane %v380_v42, 4  ;;  %v365_v63 = vadd.f32 %v364_v25, %v363_v28  ;;  %v390_v60 = vrot.slane %v389_v14, 4  ;;  %v916_v1 = vadd.f32 %v915_v17, %v914_v24 }
 0x1a9   :  { %v941_v6 = vrot.slane %v940_v13, 4  ;;  %v925_v53 = vadd.f32 %v924_v62, %v923_v33  ;;  %v950_v51 = vrot.slane %v949_v3, 4  ;;  %v357_v61 = vrot.slane %v356_v23, 2 }
 0x1aa   :  { %v382_v16 = vadd.f32 %v381_v49, %v380_v42  ;;  %v366_v20 = vrot.slane %v365_v63, 2  ;;  %v391_v46 = vadd.f32 %v390_v60, %v389_v14  ;;  %v917_v27 = vrot.slane %v916_v1, 2 }
 0x1ab   :  { %v942_v4 = vadd.f32 %v941_v6, %v940_v13  ;;  %v926_v54 = vrot.slane %v925_v53, 2  ;;  %v951_v26 = vadd.f32 %v950_v51, %v949_v3  ;;  %v358_v29 = vadd.f32 %v357_v61, %v356_v23 }
 0x1ac   :  { %v383_v44 = vrot.slane %v382_v16, 2  ;;  %v367_v57 = vadd.f32 %v366_v20, %v365_v63  ;;  %v392_v47 = vrot.slane %v391_v46, 2  ;;  %v918_v38 = vadd.f32 %v917_v27, %v916_v1 }
 0x1ad   :  { %v943_v41 = vrot.slane %v942_v4, 2  ;;  %v927_v8 = vadd.f32 %v926_v54, %v925_v53  ;;  %v952_v21 = vrot.slane %v951_v26, 2  ;;  %v359_v39 = vrot.slane %v358_v29, 1 }
 0x1ae   :  { %v384_v48 = vadd.f32 %v383_v44, %v382_v16  ;;  %v368_v35 = vrot.slane %v367_v57, 1  ;;  %v393_v58 = vadd.f32 %v392_v47, %v391_v46  ;;  %v919_v11 = vrot.slane %v918_v38, 1  ;;  %v429_v44 = vpop.permute.xlu1 %428 }
 0x1af   :  { %v944_v52 = vadd.f32 %v943_v41, %v942_v4  ;;  %v928_v28 = vrot.slane %v927_v8, 1  ;;  %v953_v15 = vadd.f32 %v952_v21, %v951_v26  ;;  %v360_v2 = vadd.f32 %v359_v39, %v358_v29  ;;  %v434_v39 = vpop.permute.xlu0 %433 }
 0x1b0   :  { %v385_v24 = vrot.slane %v384_v48, 1  ;;  %v369_v40 = vadd.f32 %v368_v35, %v367_v57  ;;  %v394_v45 = vrot.slane %v393_v58, 1  ;;  %v920_v33 = vadd.f32 %v919_v11, %v918_v38 }
 0x1b1   :  { %v945_v10 = vrot.slane %v944_v52, 1  ;;  %v929_v9 = vadd.f32 %v928_v28, %v927_v8  ;;  %v954_v42 = vrot.slane %v953_v15, 1  ;;  %v1987_v14 = vmul.f32 0.03125, %v360_v2 }
 0x1b2   :  { %v386_v25 = vadd.f32 %v385_v24, %v384_v48  ;;  %v395_v17 = vadd.f32 %v394_v45, %v393_v58  ;;  %v1989_v13 = vmul.f32 0.03125, %v369_v40  ;;  %v1991_v3 = vmul.f32 0.03125, %v920_v33  ;;  %v439_v21 = vpop.permute.xlu1 %438 }
 0x1b3   :  { %v946_v62 = vadd.f32 %v945_v10, %v944_v52  ;;  %v955_v23 = vadd.f32 %v954_v42, %v953_v15  ;;  %v1993_v49 = vmul.f32 0.03125, %v929_v9  ;;  %v400_v60 = vmul.f32 %v1987_v14, %v1987_v14  ;;  %v462_v58 = vpop.permute.xlu0 %461 }
 0x1b4   :  { %v398_v63 = vmul.f32 0.03125, %v386_v25  ;;  %v399_v1 = vmul.f32 0.03125, %v395_v17  ;;  %v401_v6 = vmul.f32 %v1989_v13, %v1989_v13  ;;  %v960_v51 = vmul.f32 %v1991_v3, %v1991_v3 }
 0x1b5   :  { %v958_v53 = vmul.f32 0.03125, %v946_v62  ;;  %v959_v61 = vmul.f32 0.03125, %v955_v23  ;;  %v961_v16 = vmul.f32 %v1993_v49, %v1993_v49  ;;  %v408_v28 = vsub.f32 %v1894_v12, %v1987_v14 }
 0x1b6   :  { %v402_v20 = vsub.f32 %v398_v63, %v400_v60  ;;  %v403_v46 = vsub.f32 %v399_v1, %v401_v6  ;;  %v2003_v48 = vpop.permute.xlu1 %456  ;;  %v409_v15 = vsub.f32 %v1897_v37, %v1989_v13  ;;  %v406_v2 = vsub.f32 %v1911_v18, %v1987_v14 }
 0x1b7   :  { %v962_v27 = vsub.f32 %v958_v53, %v960_v51  ;;  %v963_v4 = vsub.f32 %v959_v61, %v961_v16  ;;  %v407_v24 = vsub.f32 %v1915_v0, %v1989_v13  ;;  %v968_v45 = vsub.f32 %v1900_v43, %v1991_v3  ;;  %v467_v17 = vpop.permute.xlu0 %466 }
 0x1b8   :  { %v404_v54 = vmax.f32 %v402_v20, 0.0  ;;  %v405_v26 = vmax.f32 %v403_v46, 0.0  ;;  %v969_v33 = vsub.f32 %v1908_v56, %v1993_v49  ;;  %v966_v10 = vsub.f32 %v1919_v19, %v1991_v3 }
 0x1b9   :  { %v964_v29 = vmax.f32 %v962_v27, 0.0  ;;  %v965_v57 = vmax.f32 %v963_v4, 0.0  ;;  %v967_v12 = vsub.f32 %v1923_v59, %v1993_v49  ;;  %v410_v18 = vsub.f32 %v1931_v22, %v1987_v14 }
 0x1ba   :  { %v414_v47 = vadd.f32 1e-05, %v404_v54  ;;  %v415_v38 = vadd.f32 1e-05, %v405_v26  ;;  %v2005_v11 = vpop.permute.xlu1 %443  ;;  %v411_v0 = vsub.f32 %v1938_v50, %v1989_v13  ;;  %v970_v9 = vsub.f32 %v1945_v36, %v1991_v3 }
 0x1bb   :  { %v974_v41 = vadd.f32 1e-05, %v964_v29  ;;  %v975_v8 = vadd.f32 1e-05, %v965_v57  ;;  %v971_v43 = vsub.f32 %v1952_v32, %v1993_v49  ;;  %v412_v50 = vsub.f32 %v1958_v30, %v1987_v14 }
 0x1bc   :  { %1270 = vrsqrt.f32 %v414_v47  ;;  %v413_v36 = vsub.f32 %v1963_v55, %v1989_v13  ;;  %v972_v53 = vsub.f32 %v1968_v34, %v1991_v3  ;;  %v973_v51 = vsub.f32 %v1973_v7, %v1993_v49 }
 0x1bd   :  { %1272 = vrsqrt.f32 %v415_v38 }
 0x1be   :  { %1274 = vrsqrt.f32 %v974_v41  ;;  %v2031_v62 = vpop.permute.xlu1 %471 }
 0x1bf   :  { %1276 = vrsqrt.f32 %v975_v8 }
 0x1c6   :  { %v1271_v35 = vpop.eup %1270 }
 0x1c7   :  { %v1273_v52 = vpop.eup %1272  ;;  %v420_v56 = vmul.f32 %v1271_v35, %v408_v28  ;;  %v418_v25 = vmul.f32 %v1271_v35, %v406_v2  ;;  %v422_v60 = vmul.f32 %v1271_v35, %v410_v18  ;;  %v424_v13 = vmul.f32 %v1271_v35, %v412_v50 }
 0x1c8   :  { %v1275_v40 = vpop.eup %1274  ;;  %v421_v42 = vmul.f32 %v1273_v52, %v409_v15  ;;  %v419_v19 = vmul.f32 %v1273_v52, %v407_v24  ;;  %v423_v1 = vmul.f32 %v1273_v52, %v411_v0  ;;  %v425_v57 = vmul.f32 %v1273_v52, %v413_v36 }
 0x1c9   :  { %v1277_v37 = vpop.eup %1276  ;;  %v980_v59 = vmul.f32 %v1275_v40, %v968_v45  ;;  %v978_v63 = vmul.f32 %v1275_v40, %v966_v10  ;;  %v982_v32 = vmul.f32 %v1275_v40, %v970_v9  ;;  %v448_v61 = vmul.f32 %v434_v39, %v420_v56 }
 0x1ca   :  { %v981_v23 = vmul.f32 %v1277_v37, %v969_v33  ;;  %v979_v22 = vmul.f32 %v1277_v37, %v967_v12  ;;  %v983_v6 = vmul.f32 %v1277_v37, %v971_v43  ;;  %v449_v16 = vmul.f32 %v434_v39, %v421_v42 }
 0x1cb   :  { %v446_v20 = vmul.f32 %v429_v44, %v418_v25  ;;  %v447_v46 = vmul.f32 %v429_v44, %v419_v19  ;;  %v988_v54 = vmul.f32 %v980_v59, %v434_v39  ;;  %v986_v30 = vmul.f32 %v978_v63, %v429_v44 }
 0x1cc   :  { %v989_v26 = vmul.f32 %v981_v23, %v434_v39  ;;  %v987_v14 = vmul.f32 %v979_v22, %v429_v44  ;;  %v450_v29 = vmul.f32 %v439_v21, %v422_v60  ;;  %v451_v55 = vmul.f32 %v439_v21, %v423_v1 }
 0x1cd   :  { %v990_v47 = vmul.f32 %v982_v32, %v439_v21  ;;  %v991_v38 = vmul.f32 %v983_v6, %v439_v21  ;;  %v984_v34 = vmul.f32 %v1275_v40, %v972_v53  ;;  %v985_v3 = vmul.f32 %v1277_v37, %v973_v51 }
 0x1ce   :  { %v476_v41 = vadd.f32 %v462_v58, %v448_v61  ;;  %v477_v7 = vadd.f32 %v462_v58, %v449_v16  ;;  %v474_v49 = vadd.f32 %v2003_v48, %v446_v20  ;;  %v475_v8 = vadd.f32 %v2003_v48, %v447_v46 }
 0x1cf   :  { %v996_v28 = vadd.f32 %v988_v54, %v462_v58  ;;  %v997_v15 = vadd.f32 %v989_v26, %v462_v58  ;;  %v994_v39 = vadd.f32 %v986_v30, %v2003_v48  ;;  %v995_v44 = vadd.f32 %v987_v14, %v2003_v48 }
 0x1d0   :  { %v478_v35 = vadd.f32 %v467_v17, %v450_v29  ;;  %v479_v52 = vadd.f32 %v467_v17, %v451_v55  ;;  %v452_v21 = vmul.f32 %v2005_v11, %v424_v13  ;;  %v453_v40 = vmul.f32 %v2005_v11, %v425_v57 }
 0x1d1   :  { %v998_v45 = vadd.f32 %v990_v47, %v467_v17  ;;  %v999_v33 = vadd.f32 %v991_v38, %v467_v17  ;;  %v992_v10 = vmul.f32 %v984_v34, %v2005_v11  ;;  %v993_v12 = vmul.f32 %v985_v3, %v2005_v11 }
 0x1d2   :  { %v480_v60 = vadd.f32 %v2031_v62, %v452_v21  ;;  %v481_v11 = vadd.f32 %v2031_v62, %v453_v40 }
 0x1d3   :  { %v1000_v32 = vadd.f32 %v992_v10, %v2031_v62  ;;  %v1001_v6 = vadd.f32 %v993_v12, %v2031_v62 }
 0x1f3   :  { %v544_v27 = vpop.permute.xlu0 %543  ;;  %v539_v4 = vpop.permute.xlu1 %538 }
 0x1f4   :  { %v558_v37 = vmul.f32 %v544_v27, %v476_v41  ;;  %v559_v58 = vmul.f32 %v544_v27, %v477_v7  ;;  %v556_v18 = vmul.f32 %v539_v4, %v474_v49  ;;  %v557_v0 = vmul.f32 %v539_v4, %v475_v8 }
 0x1f6   :  { %v564_v22 = vadd.f32 %v558_v37, %v556_v18  ;;  %v573_v17 = vadd.f32 %v559_v58, %v557_v0 }
 0x1f7   :  { %v1063_v2 = vpop.permute.xlu0 %1062  ;;  %v1058_v24 = vpop.permute.xlu1 %1057 }
 0x1f8   :  { %v1077_v9 = vmul.f32 %v1063_v2, %v996_v28  ;;  %v1078_v43 = vmul.f32 %v1063_v2, %v997_v15  ;;  %v1075_v48 = vmul.f32 %v1058_v24, %v994_v39  ;;  %v1076_v56 = vmul.f32 %v1058_v24, %v995_v44 }
 0x1fa   :  { %v1083_v1 = vadd.f32 %v1077_v9, %v1075_v48  ;;  %v1092_v50 = vadd.f32 %v1078_v43, %v1076_v56 }
 0x1fb   :  { %v549_v42 = vpop.permute.xlu0 %548  ;;  %v1068_v25 = vpop.permute.xlu1 %1067 }
 0x1fc   :  { %v560_v19 = vmul.f32 %v549_v42, %v478_v35  ;;  %v561_v59 = vmul.f32 %v549_v42, %v479_v52  ;;  %v1079_v23 = vmul.f32 %v1068_v25, %v998_v45  ;;  %v1080_v63 = vmul.f32 %v1068_v25, %v999_v33 }
 0x1fe   :  { %v565_v53 = vadd.f32 %v564_v22, %v560_v19  ;;  %v574_v51 = vadd.f32 %v573_v17, %v561_v59  ;;  %v1084_v46 = vadd.f32 %v1083_v1, %v1079_v23  ;;  %v1093_v27 = vadd.f32 %v1092_v50, %v1080_v63  ;;  %v2169_v1 = vld [vmem:[#allocation13_spill] sm:$0xff]  ;;  %v2170_v50 = vld [vmem:[#allocation12_spill] sm:$0xff] }
 0x1ff   :  { %v554_v36 = vpop.permute.xlu0 %553  ;;  %v1073_v20 = vpop.permute.xlu1 %1072 }
 0x200   :  { %v562_v61 = vmul.f32 %v554_v36, %v480_v60  ;;  %v563_v16 = vmul.f32 %v554_v36, %v481_v11  ;;  %v1081_v4 = vmul.f32 %v1073_v20, %v1000_v32  ;;  %v1082_v54 = vmul.f32 %v1073_v20, %v1001_v6  ;;  %v2171_v36 = vld [vmem:[#allocation15_spill] sm:$0xff]  ;;  %v2172_v32 = vld [vmem:[#allocation14_spill] sm:$0xff]  ;;  %v2173_v6 = vld [vmem:[#allocation17_spill] sm:$0xff] }
 0x202   :  { %v566_v26 = vadd.f32 %v565_v53, %v562_v61  ;;  %v575_v30 = vadd.f32 %v574_v51, %v563_v16  ;;  %v1085_v14 = vadd.f32 %v1084_v46, %v1081_v4  ;;  %v1094_v29 = vadd.f32 %v1093_v27, %v1082_v54  ;;  %v2174_v53 = vld [vmem:[#allocation16_spill] sm:$0xff] }
 0x203   :  { %v1369_v46 = vmov 1966171168  }
 0x204   :  { %v567_v55 = vrot.slane %v566_v26, 4  ;;  %v576_v13 = vrot.slane %v575_v30, 4  ;;  %v1086_v57 = vrot.slane %v1085_v14, 4  ;;  %v1095_v47 = vrot.slane %v1094_v29, 4 }
 0x205   :  { %v610_v27 = vunpack.c.l.s4 %v1369_v46 }
 0x206   :  { %v568_v38 = vadd.f32 %v567_v55, %v566_v26  ;;  %v577_v34 = vadd.f32 %v576_v13, %v575_v30  ;;  %v1087_v62 = vadd.f32 %v1086_v57, %v1085_v14  ;;  %v1096_v3 = vadd.f32 %v1095_v47, %v1094_v29  ;;  %v2175_v55 = vld [vmem:[#allocation11_spill] sm:$0xff] }
 0x207   :  { %v611_v54 = vunpack.c.0.s8 %v610_v27  ;;  %v29_v47 = vld [vmem:[%s2144_s2] sm:$0xff] }
 0x208   :  { %v569_v41 = vrot.slane %v568_v38, 2  ;;  %v578_v7 = vrot.slane %v577_v34, 2  ;;  %v1088_v49 = vrot.slane %v1087_v62, 2  ;;  %v1097_v8 = vrot.slane %v1096_v3, 2 }
 0x209   :  { %v614_v13 = vsub.s32 %v611_v54, %v2175_v55 }
 0x20a   :  { %v570_v28 = vadd.f32 %v569_v41, %v568_v38  ;;  %v579_v15 = vadd.f32 %v578_v7, %v577_v34  ;;  %v1089_v2 = vadd.f32 %v1088_v49, %v1087_v62  ;;  %v1098_v39 = vadd.f32 %v1097_v8, %v1096_v3  ;;  %v1290_v38 = vld [vmem:[%s2142_s0] sm:$0xff]  ;;  %v2176_v62 = vld [vmem:[#allocation9_spill] sm:$0xff]  ;;  %v30_v8 = vld [vmem:[%s2144_s2 + $0x8] sm:$0xff] }
 0x20c   :  { %v571_v44 = vrot.slane %v570_v28, 1  ;;  %v580_v24 = vrot.slane %v579_v15, 1  ;;  %v1090_v35 = vrot.slane %v1089_v2, 1  ;;  %v1099_v52 = vrot.slane %v1098_v39, 1 }
 0x20e   :  { %v572_v21 = vadd.f32 %v571_v44, %v570_v28  ;;  %v581_v40 = vadd.f32 %v580_v24, %v579_v15  ;;  %v1091_v45 = vadd.f32 %v1090_v35, %v1089_v2  ;;  %v1100_v33 = vadd.f32 %v1099_v52, %v1098_v39  ;;  %v31_v28 = vld [vmem:[%s2144_s2 + $0x10] sm:$0xff]  ;;  %v1291_v39 = vld [vmem:[%s2142_s0 + $0x8] sm:$0xff]  ;;  %v2177_v52 = vld [vmem:[#allocation10_spill] sm:$0xff] }
 0x210   :  { %v582_v10 = vmul.f32 0.17677669, %v572_v21  ;;  %v583_v12 = vmul.f32 0.17677669, %v581_v40  ;;  %v1101_v37 = vmul.f32 0.17677669, %v1091_v45  ;;  %v2178_v45 = vlaneseq }
 0x211   :  { %v1102_v58 = vmul.f32 0.17677669, %v1100_v33 }
 0x212   :  { %v584_v18 = vmax.f32 %v582_v10, %v583_v12  ;;  %vm2080_vm2 = vcmp.lt.s32.totalorder %v2178_v45, 256 }
 0x213   :  { %v1103_v0 = vmax.f32 %v1101_v37, %v1102_v58 }
 0x214   :  { %585 = vmax.xlane.f32.xlu0 %v584_v18 }
 0x215   :  { %1104 = vmax.xlane.f32.xlu1 %v1103_v0 }
 0x226   :  { %636 = vperm.xlu1 %1262, %v1625_v5  }
 0x22a   :  { %631 = vperm.xlu0 %1263, %v1621_v31  }
 0x2a1   :  { %v586_v9 = vpop.xlane.xlu0 %585 }
 0x2a2   :  { %v587_v43 = vsub.f32 %v582_v10, %v586_v9  ;;  %v588_v48 = vsub.f32 %v583_v12, %v586_v9  ;;  %v1105_v56 = vpop.xlane.xlu1 %1104 }
 0x2a3   :  { %v1106_v42 = vsub.f32 %v1101_v37, %v1105_v56  ;;  %v1107_v25 = vsub.f32 %v1102_v58, %v1105_v56 }
 0x2a4   :  { %v589_v19 = vmul.f32 1.442695, %v587_v43  ;;  %v591_v59 = vmul.f32 1.442695, %v588_v48  ;;  %v32_v48 = vld [vmem:[%s2144_s2 + $0x18] sm:$0xff] }
 0x2a5   :  { %v1108_v23 = vmul.f32 1.442695, %v1106_v42  ;;  %v1110_v63 = vmul.f32 1.442695, %v1107_v25 }
 0x2a6   :  { %1278 = vpow2.f32 %v589_v19  ;;  %v637_v61 = vpop.permute.xlu1 %636 }
 0x2a7   :  { %1280 = vpow2.f32 %v591_v59  ;;  %v650_v12 = vmul.f32 %v637_v61, %v30_v8 }
 0x2a8   :  { %1282 = vpow2.f32 %v1108_v23 }
 0x2a9   :  { %1284 = vpow2.f32 %v1110_v63  ;;  %v632_v51 = vpop.permute.xlu0 %631 }
 0x2aa   :  { %v649_v35 = vmul.f32 %v632_v51, %v29_v47 }
 0x2ac   :  { %v654_v9 = vsel %vm653_vm3, %v649_v35, 0.0 }
 0x2b0   :  { %v1279_v22 = vpop.eup %1278 }
 0x2b1   :  { %v1281_v17 = vpop.eup %1280 }
 0x2b2   :  { %v1283_v60 = vpop.eup %1282  ;;  %v593_v5 = vadd.f32 %v1281_v17, %v1279_v22 }
 0x2b3   :  { %v1285_v11 = vpop.eup %1284 }
 0x2b4   :  { %594 = vadd.xlane.f32.xlu0 %v593_v5  ;;  %v1112_v31 = vadd.f32 %v1285_v11, %v1283_v60 }
 0x2b6   :  { %1113 = vadd.xlane.f32.xlu1 %v1112_v31 }
 0x2ca   :  { %1148 = vperm.xlu0 %1263, %v2169_v1  }
 0x2ce   :  { %1153 = vperm.xlu0 %1263, %v2170_v50  }
 0x2d2   :  { %641 = vperm.xlu0 %1263, %v2171_v36  }
 0x2d6   :  { %1158 = vperm.xlu0 %1263, %v2172_v32  }
 0x2da   :  { %646 = vperm.xlu0 %1263, %v2173_v6  }
 0x2de   :  { %1163 = vperm.xlu0 %1263, %v2174_v53  }
 0x341   :  { %v595_v16 = vpop.xlane.xlu0 %594 }
 0x342   :  { %1286 = vrcp.f32 %v595_v16 }
 0x343   :  { %v1114_v20 = vpop.xlane.xlu1 %1113 }
 0x344   :  { %1288 = vrcp.f32 %v1114_v20 }
 0x349   :  { %v1149_v4 = vpop.permute.xlu0 %1148 }
 0x34c   :  { %v1287_v26 = vpop.eup %1286 }
 0x34d   :  { %v1154_v30 = vpop.permute.xlu0 %1153  ;;  %v597_v14 = vmul.f32 %v1287_v26, %v1279_v22  ;;  %v598_v29 = vmul.f32 %v1287_v26, %v1281_v17 }
 0x34e   :  { %v1289_v57 = vpop.eup %1288  ;;  %v1167_v43 = vmul.f32 %v1154_v30, %v30_v8 }
 0x34f   :  { %v599_v34 = vmul.f32 %v1290_v38, %v597_v14  ;;  %v600_v3 = vmul.f32 %v598_v29, %v2176_v62  ;;  %v608_v41 = vcombine.low %v597_v14, %v598_v29  ;;  %v1116_v7 = vmul.f32 %v1289_v57, %v1283_v60 }
 0x350   :  { %v1117_v49 = vmul.f32 %v1289_v57, %v1285_v11 }
 0x351   :  { %v642_v15 = vpop.permute.xlu0 %641  ;;  %v603_v2 = vcombine.low %v599_v34, %v600_v3  ;;  %v1118_v44 = vmul.f32 %v1291_v39, %v1116_v7  ;;  %v615_v24 = vrot.slane %v608_v41, %v614_v13 }
 0x352   :  { %v1119_v21 = vmul.f32 %v1117_v49, %v2177_v52  ;;  %v1128_v40 = vcombine.low %v1116_v7, %v1117_v49  ;;  %v651_v37 = vmul.f32 %v642_v15, %v31_v28 }
 0x353   :  { %605 = vst [vmem:[#allocation2] sm:$0xff] %v603_v2  ;;  %v622_v10 = vrot.slane %v615_v24, %v614_v13 }
 0x354   :  { %v1122_v58 = vcombine.low %v1118_v44, %v1119_v21  ;;  %v1135_v18 = vrot.slane %v1128_v40, %v614_v13 }
 0x355   :  { %v1159_v0 = vpop.permute.xlu0 %1158  ;;  %628 = vst.msk [vmem:[#allocation6] sm:$0x3] %vm2080_vm2, %v622_v10 }
 0x356   :  { %1125 = vst [vmem:[#allocation2 + $0x8] sm:$0xff] %v1122_v58  ;;  %v1142_v56 = vrot.slane %v1135_v18, %v614_v13 }
 0x357   :  { %1303 = shalt.err (!%p1300_p4)
}
 0x358   :  { %s1304_s21 = scalar_lea.hbm %s2147_s5, 256 }
 0x359   :  { %p1305_p5 = scmp.ne.s32.totalorder %s2147_s5, %s1304_s21  ;;  %p1308_p6 = scmp.lt.u32.totalorder %s1304_s21, %s2147_s5 }
 0x35b   :  { %p1310_p7 = pnand %p1308_p6, %p1305_p5 }
 0x35d   :  { %1313 = shalt.err (!%p1310_p7)
}
 0x35e   :  { %s1371_s2 = smov 128   ;;  %s1372_s26 = smov 8   ;;  %v655_v42 = vsel %vm653_vm3, %v650_v12, 0.0  ;;  %v1166_v25 = vmul.f32 %v1149_v4, %v29_v47  ;;  %v657_v19 = vsel %vm653_vm3, %v651_v37, 0.0  ;;  %v1168_v59 = vmul.f32 %v1159_v0, %v31_v28  ;;  %1145 = vst.msk [vmem:[#allocation6 + $0x2] sm:$0x3] %vm2080_vm2, %v1142_v56  ;;  %v647_v63 = vpop.permute.xlu0 %646 }
 0x35f   :  { %1196 = dma.vmem_to_hbm [thread:$0]  %s1191_s16, 256, %s2147_s5, [#allocation3], %s1371_s2, %s1371_s2, %s1372_s26   ;;  %v656_v23 = vadd.f32 %v655_v42, %v654_v9  ;;  %v1171_v22 = vsel %vm653_vm3, %v1167_v43, 0.0  ;;  %v652_v17 = vmul.f32 %v647_v63, %v32_v48  ;;  %vm667_vm4 = vcmask 24576  }
 0x360   :  { %v1170_v5 = vsel %vm653_vm3, %v1166_v25, 0.0  ;;  %v1173_v11 = vsel %vm653_vm3, %v1168_v59, 0.0  ;;  %s1373_s5 = smov [#allocation4]   ;;  %s1374_s30 = smov [#allocation6]  }
 0x361   :  { %v658_v60 = vadd.f32 %v657_v19, %v656_v23  ;;  %v659_v31 = vsel %vm653_vm3, %v652_v17, 0.0  ;;  %v1172_v1 = vadd.f32 %v1171_v22, %v1170_v5  ;;  %s1202_s29 = sshll.u32 %s1373_s5, 4  ;;  %s1214_s3 = sshll.u32 %s1374_s30, 4  ;;  %s1203_s29 = int_to_ptr.vmem [resolvable:$true] %s1202_s29  ;;  %s2111_s3 = int_to_ptr.vmem [resolvable:$true] %s1214_s3 }
 0x362   :  { %v1164_v36 = vpop.permute.xlu0 %1163  ;;  %s1314_s4 = scalar_lea.vmem %s1203_s29, 32  ;;  %p1319_p9 = scmp.lt.s32.totalorder %s1203_s29, %s1203_s29 }
 0x363   :  { %v660_v50 = vadd.f32 %v659_v31, %v658_v60  ;;  %v1169_v32 = vmul.f32 %v1164_v36, %v32_v48  ;;  %v1174_v6 = vadd.f32 %v1173_v11, %v1172_v1  ;;  %p1315_p8 = scmp.ne.s32.totalorder %s1203_s29, %s1314_s4  ;;  %p1320_p10 = scmp.lt.s32.totalorder %s1314_s4, %s1314_s4 }
 0x365   :  { %v661_v53 = vrot.slane %v660_v50, 4  ;;  %v1175_v51 = vsel %vm653_vm3, %v1169_v32, 0.0  ;;  %p1321_p11 = por %p1320_p10, %p1319_p9 }
 0x366   :  { %v1176_v16 = vadd.f32 %v1175_v51, %v1174_v6 }
 0x367   :  { %v662_v61 = vadd.f32 %v661_v53, %v660_v50  ;;  %p1322_p12 = pnand %p1321_p11, %p1315_p8 }
 0x368   :  { %v1177_v46 = vrot.slane %v1176_v16, 4 }
 0x369   :  { %v663_v20 = vrot.slane %v662_v61, 2 }
 0x36a   :  { %v1178_v4 = vadd.f32 %v1177_v46, %v1176_v16 }
 0x36b   :  { %v664_v27 = vadd.f32 %v663_v20, %v662_v61 }
 0x36c   :  { %v1179_v26 = vrot.slane %v1178_v4, 2 }
 0x36d   :  { %v665_v54 = vrot.slane %v664_v27, 1 }
 0x36e   :  { %v1180_v14 = vadd.f32 %v1179_v26, %v1178_v4 }
 0x36f   :  { %v666_v30 = vadd.f32 %v665_v54, %v664_v27 }
 0x370   :  { %v1181_v29 = vrot.slane %v1180_v14, 1 }
 0x371   :  { %668 = vst.msk [vmem:[#allocation4] sm:$0x1] %vm667_vm4, %v666_v30 }
 0x372   :  { %v1182_v55 = vadd.f32 %v1181_v29, %v1180_v14 }
 0x374   :  { %1184 = vst.msk [vmem:[#allocation4 + $0x1] sm:$0x1] %vm667_vm4, %v1182_v55 }
 0x375   :  { %1325 = shalt.err (!%p1322_p12)
}
 0x376   :  { %s1326_s10 = scalar_lea.hbm %s2148_s6, 32 }
 0x377   :  { %p1327_p13 = scmp.ne.s32.totalorder %s2148_s6, %s1326_s10  ;;  %p1330_p0 = scmp.lt.u32.totalorder %s1326_s10, %s2148_s6 }
 0x379   :  { %p1332_p1 = pnand %p1330_p0, %p1327_p13 }
 0x37b   :  { %1335 = shalt.err (!%p1332_p1)
}
 0x37c   :  { %s1375_s15 = smov 16   ;;  %s1376_s1 = smov 1  }
 0x37d   :  { %1208 = dma.vmem_to_hbm [thread:$0]  %s1203_s29, 32, %s2148_s6, [#allocation5], %s1375_s15, %s1375_s15, %s1376_s1  }
 0x37e   :  { %s1336_s17 = scalar_lea.vmem %s2111_s3, 64  ;;  %p1341_p3 = scmp.lt.s32.totalorder %s2111_s3, %s2111_s3 }
 0x37f   :  { %p1337_p2 = scmp.ne.s32.totalorder %s2111_s3, %s1336_s17  ;;  %p1342_p4 = scmp.lt.s32.totalorder %s1336_s17, %s1336_s17 }
 0x381   :  { %p1343_p5 = por %p1342_p4, %p1341_p3 }
 0x383   :  { %p1344_p6 = pnand %p1343_p5, %p1337_p2 }
 0x385   :  { %1347 = shalt.err (!%p1344_p6)
}
 0x386   :  { %s1348_s20 = scalar_lea.hbm %s2149_s7, 64 }
 0x387   :  { %p1349_p7 = scmp.ne.s32.totalorder %s2149_s7, %s1348_s20  ;;  %p1352_p8 = scmp.lt.u32.totalorder %s1348_s20, %s2149_s7 }
 0x389   :  { %p1354_p9 = pnand %p1352_p8, %p1349_p7 }
 0x38b   :  { %1357 = shalt.err (!%p1354_p9)
}
 0x38c   :  { %s1377_s6 = smov 32   ;;  %s1378_s25 = smov 2  }
 0x38d   :  { %1220 = dma.vmem_to_hbm [thread:$0]  %s2111_s3, 64, %s2149_s7, [#allocation5], %s1377_s6, %s1377_s6, %s1378_s25  }
 0x38e   :  { %1358 = dma.done.wait [#allocation3], 256  }
 0x38f   :  { %1359 = vsyncadd [#allocation3], 4294967040 }
 0x390   :  { %1360 = dma.done.wait [#allocation5], 96  }
 0x391   :  { %1361 = vsyncadd [#allocation5], 4294967200 }
 0x392   :  { %1230 = vsyncpa [#allocation3], 1 }
 0x393   :  { %1231 = vsyncpa [#allocation5], 1 }

</bundles_post_ra>
